<compile_context>
chip_gen: v5e
topology: v5e:2x2
jax: 0.10.0
libtpu: 0.0.40
codegen_flags: <defaults>
</compile_context>

<pallas_src>
import functools

import jax
import jax.numpy as jnp
import numpy as np
from jax import lax
from jax.experimental import pallas as pl
from jax.experimental.pallas import tpu as pltpu


def _lstm_kernel(xproj_ref, wcat_ref, whh1_ref, b1_ref, wfc_ref, bfc_ref, out_ref):
    """Whole 2-layer LSTM + final Linear, single invocation.

    xproj_ref : (S, B, 4H)  x @ W_ih0^T + (b_ih0 + b_hh0), time-major, i/f/o cols pre-scaled by 0.5
    wcat_ref  : (H, 8H)     [W_hh0 | W_ih1] (transposed, i/f/o cols pre-scaled by 0.5)
    whh1_ref  : (H, 4H)     layer-1 recurrent weight (transposed, scaled)
    b1_ref    : (1, 4H)     layer-1 bias (b_ih1 + b_hh1, scaled)
    wfc_ref   : (H, O)      FC weight (transposed)
    bfc_ref   : (1, O)      FC bias
    out_ref   : (B, O)      fc(h1[S-1])
    """
    S, B, G = xproj_ref.shape
    H = G // 4

    # Hoist weight loads and the bias broadcast out of the (unrolled) time loop
    # (JAX does not CSE broadcast_in_dim across unrolled iterations).
    wcat = wcat_ref[...]
    whh1 = whh1_ref[...]
    b1 = jnp.broadcast_to(b1_ref[...], (B, G))

    def gate_act(gates, c_prev):
        # Single full-vreg EUP pass: the i/f/o pre-activations were pre-scaled by
        # 0.5, so sigmoid(z) == 0.5*tanh(z/2) + 0.5 becomes 0.5*t + 0.5 here.
        # PyTorch gate order along 4H is [i | f | g | o].
        # (Lane slices at offsets H/2H/3H lower to XLU moves; off critical path.)
        t = jnp.tanh(gates)
        i_g = 0.5 * t[:, 0:H] + 0.5
        f_g = 0.5 * t[:, H:2 * H] + 0.5
        g_g = t[:, 2 * H:3 * H]
        o_g = 0.5 * t[:, 3 * H:4 * H] + 0.5
        c_new = f_g * c_prev + i_g * g_g
        h_new = o_g * jnp.tanh(c_new)
        return h_new, c_new

    def step(t, carry):
        # p0 = h0[t-1] @ [W_hh0 | W_ih1]  (computed last step; zero at t=0)
        p0, c0, h1, c1 = carry
        # Layer 0: only a VPU add on the critical path (recurrent matmul was fused
        # into last step's single MXU op).
        g0 = xproj_ref[t] + p0[:, 0:G]
        h0, c0 = gate_act(g0, c0)
        # The single h0-dependent MXU op of this step (N = 8H; on v7x/v6e one
        # 2x256 pass, on v5e two 128-lane column tiles but still one dependency hop).
        p = jnp.dot(h0, wcat, preferred_element_type=jnp.float32)
        # Layer 1: h1 @ W_hh1 depends only on the previous step's h1 -> overlaps the
        # h0 chain.  dot + dot feeding one add lets v7x accumulate in the MRB.
        g1 = p[:, G:2 * G] + jnp.dot(h1, whh1, preferred_element_type=jnp.float32) + b1
        h1, c1 = gate_act(g1, c1)
        return (p, c0, h1, c1)

    zeros_h = jnp.zeros((B, H), jnp.float32)
    zeros_p = jnp.zeros((B, 2 * G), jnp.float32)
    # Full unroll for short sequences (one scheduling window, cross-step ILP);
    # partial unroll for long ones (recurrence bounds useful ILP to ~2 steps, so
    # bigger unrolls only inflate code size / vreg live ranges).
    _, _, h1, _ = lax.fori_loop(0, S, step, (zeros_p, zeros_h, zeros_h, zeros_h),
                                unroll=(True if S <= 16 else 2))

    # Fused final Linear on the last hidden state.
    out_ref[...] = (jnp.dot(h1, wfc_ref[...], preferred_element_type=jnp.float32)
                    + bfc_ref[...]).astype(out_ref.dtype)


def lstm_timeseries_forward(x, params, *, hidden_size):
    """x: (batch, seq, input_size) float32 — same as PyTorch batch_first input."""
    B, S, I = x.shape
    H = hidden_size
    G = 4 * H
    O = params["w_fc_t"].shape[1]
    del I

    # Fold the 0.5 pre-scale (for the tanh-based sigmoid) into every weight/bias
    # that feeds the gate pre-activations: columns [i | f | o] scaled, [g] kept.
    s = jnp.concatenate([jnp.full((H,), 0.5, jnp.float32),
                         jnp.full((H,), 0.5, jnp.float32),
                         jnp.ones((H,), jnp.float32),
                         jnp.full((H,), 0.5, jnp.float32)])

    w_ih0 = params["w_ih0_t"] * s
    b0 = params["b0"] * s
    # Fuse the two h0-dependent matmuls into one N-concatenated weight.
    w_cat = jnp.concatenate([params["w_hh0_t"] * s, params["w_ih1_t"] * s], axis=1)
    w_hh1 = params["w_hh1_t"] * s
    b1 = params["b1"] * s

    # Non-recurrent layer-0 input projection hoisted off the serial path, produced
    # time-major directly (no separate transpose kernel).
    # TODO(synk): at scale, compute this in the kernel prologue instead (with I=1 it
    # is a broadcast-multiply) to avoid the HBM round-trip of an (S,B,4H) slab.
    x_proj = jnp.einsum("bsi,ig->sbg", x, w_ih0) + b0          # (S, B, 4H)

    vmem = pl.BlockSpec(memory_space=pltpu.MemorySpace.VMEM)

    # Single invocation (grid=()): everything resident in VMEM.  At these sizes the
    # total footprint is ~100 KiB; x_proj bytes = S*B*4H*4 must stay well under the
    # 32 MiB scoped default (64 MiB total on v7x) before streaming is needed.
    return pl.pallas_call(
        _lstm_kernel,
        out_shape=jax.ShapeDtypeStruct((B, O), jnp.float32),
        in_specs=[vmem] * 6,
        out_specs=vmem,
    )(x_proj, w_cat, w_hh1, b1, params["w_fc_t"], params["b_fc"])


def init_params(key, input_size, hidden_size, output_size):
    """Deterministic init mirroring nn.LSTM / nn.Linear parameter shapes.

    PyTorch gate order along the 4H axis is [i, f, g, o].  Weights are pre-transposed
    so compute is x @ W and the ih/hh biases are pre-summed.  (The 0.5 gate-column
    scaling for the tanh-sigmoid trick is applied in the wrapper, not here, so these
    params stay reference-faithful.)
    """
    H = hidden_size
    stdv = 1.0 / np.sqrt(H)
    keys = jax.random.split(key, 10)
    u = lambda k, shape: jax.random.uniform(k, shape, jnp.float32, -stdv, stdv)

    # layer 0
    w_ih0 = u(keys[0], (4 * H, input_size))
    w_hh0 = u(keys[1], (4 * H, H))
    b_ih0 = u(keys[2], (4 * H,))
    b_hh0 = u(keys[3], (4 * H,))
    # layer 1
    w_ih1 = u(keys[4], (4 * H, H))
    w_hh1 = u(keys[5], (4 * H, H))
    b_ih1 = u(keys[6], (4 * H,))
    b_hh1 = u(keys[7], (4 * H,))
    # fc
    w_fc = jax.random.uniform(keys[8], (output_size, H), jnp.float32, -stdv, stdv)
    b_fc = jax.random.uniform(keys[9], (output_size,), jnp.float32, -stdv, stdv)

    return {
        "w_ih0_t": w_ih0.T, "w_hh0_t": w_hh0.T, "b0": (b_ih0 + b_hh0)[None, :],
        "w_ih1_t": w_ih1.T, "w_hh1_t": w_hh1.T, "b1": (b_ih1 + b_hh1)[None, :],
        "w_fc_t": w_fc.T, "b_fc": b_fc[None, :],
    }


def reference_forward(x, params, *, hidden_size):
    """Pure-JAX reference of the same forward pass (exp-based sigmoid, unfused)."""
    B, S, I = x.shape
    H = hidden_size

    def cell(x_in, h, c, wih_t, whh_t, b):
        gates = x_in @ wih_t + h @ whh_t + b
        i = jax.nn.sigmoid(gates[:, 0:H])
        f = jax.nn.sigmoid(gates[:, H:2 * H])
        g = jnp.tanh(gates[:, 2 * H:3 * H])
        o = jax.nn.sigmoid(gates[:, 3 * H:4 * H])
        c_new = f * c + i * g
        h_new = o * jnp.tanh(c_new)
        return h_new, c_new

    h0 = c0 = h1 = c1 = jnp.zeros((B, H), jnp.float32)
    for t in range(S):
        h0, c0 = cell(x[:, t, :], h0, c0, params["w_ih0_t"], params["w_hh0_t"], params["b0"])
        h1, c1 = cell(h0, h1, c1, params["w_ih1_t"], params["w_hh1_t"], params["b1"])
    return h1 @ params["w_fc_t"] + params["b_fc"]


if __name__ == "__main__":
    BATCH, SEQ, INPUT_SIZE, HIDDEN_SIZE, OUTPUT_SIZE = 8, 8, 1, 32, 1

    key = jax.random.PRNGKey(0)
    k_x, k_p = jax.random.split(key)
    x = jax.random.normal(k_x, (BATCH, SEQ, INPUT_SIZE), jnp.float32)
    params = init_params(k_p, INPUT_SIZE, HIDDEN_SIZE, OUTPUT_SIZE)

    fwd = jax.jit(functools.partial(lstm_timeseries_forward, hidden_size=HIDDEN_SIZE))
    out = fwd(x, params)
    out = jax.block_until_ready(out)

    ref = reference_forward(x, params, hidden_size=HIDDEN_SIZE)
    # Slightly looser than 1e-5: the kernel's tanh-identity sigmoid and the folded
    # 0.5 weight scaling round differently from the exp-based reference sigmoid.
    np.testing.assert_allclose(np.asarray(out), np.asarray(ref), rtol=2e-5, atol=2e-5)

    print("KERNEL_OK")
</pallas_src>

<mosaic_0001>
module attributes {stable_mosaic.version = 11 : i64} {
  func.func @_lstm_kernel(%arg0: memref<8x8x128xf32, #tpu.memory_space<vmem>>, %arg1: memref<32x256xf32, #tpu.memory_space<vmem>>, %arg2: memref<32x128xf32, #tpu.memory_space<vmem>>, %arg3: memref<1x128xf32, #tpu.memory_space<vmem>>, %arg4: memref<32x1xf32, #tpu.memory_space<vmem>>, %arg5: memref<1x1xf32, #tpu.memory_space<vmem>>, %arg6: memref<8x1xf32, #tpu.memory_space<vmem>>) attributes {dimension_semantics = [], scalar_prefetch = 0 : i64, scratch_operands = 0 : i64, tpu.core_type = #tpu.core_type<tc>} {
    %c0 = arith.constant 0 : index
    %c0_0 = arith.constant 0 : index
    %0 = vector.load %arg1[%c0, %c0_0] : memref<32x256xf32, #tpu.memory_space<vmem>>, vector<32x256xf32>
    %c0_1 = arith.constant 0 : index
    %c0_2 = arith.constant 0 : index
    %1 = vector.load %arg2[%c0_1, %c0_2] : memref<32x128xf32, #tpu.memory_space<vmem>>, vector<32x128xf32>
    %c0_3 = arith.constant 0 : index
    %c0_4 = arith.constant 0 : index
    %2 = vector.load %arg3[%c0_3, %c0_4] : memref<1x128xf32, #tpu.memory_space<vmem>>, vector<1x128xf32>
    %3 = vector.shape_cast %2 : vector<1x128xf32> to vector<1x128xf32>
    %4 = vector.broadcast %3 : vector<1x128xf32> to vector<8x128xf32>
    %cst = arith.constant 0.000000e+00 : f32
    %5 = vector.broadcast %cst : f32 to vector<8x32xf32>
    %cst_5 = arith.constant 0.000000e+00 : f32
    %6 = vector.broadcast %cst_5 : f32 to vector<8x256xf32>
    %c0_i32 = arith.constant 0 : i32
    %7 = arith.index_cast %c0_i32 : i32 to index
    %c0_6 = arith.constant 0 : index
    %c0_7 = arith.constant 0 : index
    %8 = vector.load %arg0[%7, %c0_6, %c0_7] : memref<8x8x128xf32, #tpu.memory_space<vmem>>, vector<1x8x128xf32>
    %9 = vector.shape_cast %8 : vector<1x8x128xf32> to vector<8x128xf32>
    %10 = vector.extract_strided_slice %6 {offsets = [0, 0], sizes = [8, 128], strides = [1, 1]} : vector<8x256xf32> to vector<8x128xf32>
    %11 = arith.addf %9, %10 : vector<8x128xf32>
    %12 = math.tanh %11 : vector<8x128xf32>
    %13 = vector.extract_strided_slice %12 {offsets = [0, 0], sizes = [8, 32], strides = [1, 1]} : vector<8x128xf32> to vector<8x32xf32>
    %cst_8 = arith.constant 5.000000e-01 : f32
    %14 = vector.broadcast %cst_8 : f32 to vector<8x32xf32>
    %15 = arith.mulf %14, %13 : vector<8x32xf32>
    %cst_9 = arith.constant 5.000000e-01 : f32
    %16 = vector.broadcast %cst_9 : f32 to vector<8x32xf32>
    %17 = arith.addf %15, %16 : vector<8x32xf32>
    %18 = vector.extract_strided_slice %12 {offsets = [0, 32], sizes = [8, 32], strides = [1, 1]} : vector<8x128xf32> to vector<8x32xf32>
    %cst_10 = arith.constant 5.000000e-01 : f32
    %19 = vector.broadcast %cst_10 : f32 to vector<8x32xf32>
    %20 = arith.mulf %19, %18 : vector<8x32xf32>
    %cst_11 = arith.constant 5.000000e-01 : f32
    %21 = vector.broadcast %cst_11 : f32 to vector<8x32xf32>
    %22 = arith.addf %20, %21 : vector<8x32xf32>
    %23 = vector.extract_strided_slice %12 {offsets = [0, 64], sizes = [8, 32], strides = [1, 1]} : vector<8x128xf32> to vector<8x32xf32>
    %24 = vector.extract_strided_slice %12 {offsets = [0, 96], sizes = [8, 32], strides = [1, 1]} : vector<8x128xf32> to vector<8x32xf32>
    %cst_12 = arith.constant 5.000000e-01 : f32
    %25 = vector.broadcast %cst_12 : f32 to vector<8x32xf32>
    %26 = arith.mulf %25, %24 : vector<8x32xf32>
    %cst_13 = arith.constant 5.000000e-01 : f32
    %27 = vector.broadcast %cst_13 : f32 to vector<8x32xf32>
    %28 = arith.addf %26, %27 : vector<8x32xf32>
    %29 = arith.mulf %22, %5 : vector<8x32xf32>
    %30 = arith.mulf %17, %23 : vector<8x32xf32>
    %31 = arith.addf %29, %30 : vector<8x32xf32>
    %32 = math.tanh %31 : vector<8x32xf32>
    %33 = arith.mulf %28, %32 : vector<8x32xf32>
    %cst_14 = arith.constant dense<0.000000e+00> : vector<8x256xf32>
    %34 = tpu.matmul %33, %0, %cst_14 {dimension_numbers = #tpu.dot_dimension_numbers<[1], [0], [0], [1], [0, 0, 1, 1], [], []>} : vector<8x32xf32>, vector<32x256xf32>, vector<8x256xf32> -> vector<8x256xf32>
    %35 = vector.extract_strided_slice %34 {offsets = [0, 128], sizes = [8, 128], strides = [1, 1]} : vector<8x256xf32> to vector<8x128xf32>
    %cst_15 = arith.constant dense<0.000000e+00> : vector<8x128xf32>
    %36 = tpu.matmul %5, %1, %cst_15 {dimension_numbers = #tpu.dot_dimension_numbers<[1], [0], [0], [1], [0, 0, 1, 1], [], []>} : vector<8x32xf32>, vector<32x128xf32>, vector<8x128xf32> -> vector<8x128xf32>
    %37 = arith.addf %35, %36 : vector<8x128xf32>
    %38 = arith.addf %37, %4 : vector<8x128xf32>
    %39 = math.tanh %38 : vector<8x128xf32>
    %40 = vector.extract_strided_slice %39 {offsets = [0, 0], sizes = [8, 32], strides = [1, 1]} : vector<8x128xf32> to vector<8x32xf32>
    %cst_16 = arith.constant 5.000000e-01 : f32
    %41 = vector.broadcast %cst_16 : f32 to vector<8x32xf32>
    %42 = arith.mulf %41, %40 : vector<8x32xf32>
    %cst_17 = arith.constant 5.000000e-01 : f32
    %43 = vector.broadcast %cst_17 : f32 to vector<8x32xf32>
    %44 = arith.addf %42, %43 : vector<8x32xf32>
    %45 = vector.extract_strided_slice %39 {offsets = [0, 32], sizes = [8, 32], strides = [1, 1]} : vector<8x128xf32> to vector<8x32xf32>
    %cst_18 = arith.constant 5.000000e-01 : f32
    %46 = vector.broadcast %cst_18 : f32 to vector<8x32xf32>
    %47 = arith.mulf %46, %45 : vector<8x32xf32>
    %cst_19 = arith.constant 5.000000e-01 : f32
    %48 = vector.broadcast %cst_19 : f32 to vector<8x32xf32>
    %49 = arith.addf %47, %48 : vector<8x32xf32>
    %50 = vector.extract_strided_slice %39 {offsets = [0, 64], sizes = [8, 32], strides = [1, 1]} : vector<8x128xf32> to vector<8x32xf32>
    %51 = vector.extract_strided_slice %39 {offsets = [0, 96], sizes = [8, 32], strides = [1, 1]} : vector<8x128xf32> to vector<8x32xf32>
    %cst_20 = arith.constant 5.000000e-01 : f32
    %52 = vector.broadcast %cst_20 : f32 to vector<8x32xf32>
    %53 = arith.mulf %52, %51 : vector<8x32xf32>
    %cst_21 = arith.constant 5.000000e-01 : f32
    %54 = vector.broadcast %cst_21 : f32 to vector<8x32xf32>
    %55 = arith.addf %53, %54 : vector<8x32xf32>
    %56 = arith.mulf %49, %5 : vector<8x32xf32>
    %57 = arith.mulf %44, %50 : vector<8x32xf32>
    %58 = arith.addf %56, %57 : vector<8x32xf32>
    %59 = math.tanh %58 : vector<8x32xf32>
    %60 = arith.mulf %55, %59 : vector<8x32xf32>
    %c1_i32 = arith.constant 1 : i32
    %61 = arith.index_cast %c1_i32 : i32 to index
    %c0_22 = arith.constant 0 : index
    %c0_23 = arith.constant 0 : index
    %62 = vector.load %arg0[%61, %c0_22, %c0_23] : memref<8x8x128xf32, #tpu.memory_space<vmem>>, vector<1x8x128xf32>
    %63 = vector.shape_cast %62 : vector<1x8x128xf32> to vector<8x128xf32>
    %64 = vector.extract_strided_slice %34 {offsets = [0, 0], sizes = [8, 128], strides = [1, 1]} : vector<8x256xf32> to vector<8x128xf32>
    %65 = arith.addf %63, %64 : vector<8x128xf32>
    %66 = math.tanh %65 : vector<8x128xf32>
    %67 = vector.extract_strided_slice %66 {offsets = [0, 0], sizes = [8, 32], strides = [1, 1]} : vector<8x128xf32> to vector<8x32xf32>
    %cst_24 = arith.constant 5.000000e-01 : f32
    %68 = vector.broadcast %cst_24 : f32 to vector<8x32xf32>
    %69 = arith.mulf %68, %67 : vector<8x32xf32>
    %cst_25 = arith.constant 5.000000e-01 : f32
    %70 = vector.broadcast %cst_25 : f32 to vector<8x32xf32>
    %71 = arith.addf %69, %70 : vector<8x32xf32>
    %72 = vector.extract_strided_slice %66 {offsets = [0, 32], sizes = [8, 32], strides = [1, 1]} : vector<8x128xf32> to vector<8x32xf32>
    %cst_26 = arith.constant 5.000000e-01 : f32
    %73 = vector.broadcast %cst_26 : f32 to vector<8x32xf32>
    %74 = arith.mulf %73, %72 : vector<8x32xf32>
    %cst_27 = arith.constant 5.000000e-01 : f32
    %75 = vector.broadcast %cst_27 : f32 to vector<8x32xf32>
    %76 = arith.addf %74, %75 : vector<8x32xf32>
    %77 = vector.extract_strided_slice %66 {offsets = [0, 64], sizes = [8, 32], strides = [1, 1]} : vector<8x128xf32> to vector<8x32xf32>
    %78 = vector.extract_strided_slice %66 {offsets = [0, 96], sizes = [8, 32], strides = [1, 1]} : vector<8x128xf32> to vector<8x32xf32>
    %cst_28 = arith.constant 5.000000e-01 : f32
    %79 = vector.broadcast %cst_28 : f32 to vector<8x32xf32>
    %80 = arith.mulf %79, %78 : vector<8x32xf32>
    %cst_29 = arith.constant 5.000000e-01 : f32
    %81 = vector.broadcast %cst_29 : f32 to vector<8x32xf32>
    %82 = arith.addf %80, %81 : vector<8x32xf32>
    %83 = arith.mulf %76, %31 : vector<8x32xf32>
    %84 = arith.mulf %71, %77 : vector<8x32xf32>
    %85 = arith.addf %83, %84 : vector<8x32xf32>
    %86 = math.tanh %85 : vector<8x32xf32>
    %87 = arith.mulf %82, %86 : vector<8x32xf32>
    %cst_30 = arith.constant dense<0.000000e+00> : vector<8x256xf32>
    %88 = tpu.matmul %87, %0, %cst_30 {dimension_numbers = #tpu.dot_dimension_numbers<[1], [0], [0], [1], [0, 0, 1, 1], [], []>} : vector<8x32xf32>, vector<32x256xf32>, vector<8x256xf32> -> vector<8x256xf32>
    %89 = vector.extract_strided_slice %88 {offsets = [0, 128], sizes = [8, 128], strides = [1, 1]} : vector<8x256xf32> to vector<8x128xf32>
    %cst_31 = arith.constant dense<0.000000e+00> : vector<8x128xf32>
    %90 = tpu.matmul %60, %1, %cst_31 {dimension_numbers = #tpu.dot_dimension_numbers<[1], [0], [0], [1], [0, 0, 1, 1], [], []>} : vector<8x32xf32>, vector<32x128xf32>, vector<8x128xf32> -> vector<8x128xf32>
    %91 = arith.addf %89, %90 : vector<8x128xf32>
    %92 = arith.addf %91, %4 : vector<8x128xf32>
    %93 = math.tanh %92 : vector<8x128xf32>
    %94 = vector.extract_strided_slice %93 {offsets = [0, 0], sizes = [8, 32], strides = [1, 1]} : vector<8x128xf32> to vector<8x32xf32>
    %cst_32 = arith.constant 5.000000e-01 : f32
    %95 = vector.broadcast %cst_32 : f32 to vector<8x32xf32>
    %96 = arith.mulf %95, %94 : vector<8x32xf32>
    %cst_33 = arith.constant 5.000000e-01 : f32
    %97 = vector.broadcast %cst_33 : f32 to vector<8x32xf32>
    %98 = arith.addf %96, %97 : vector<8x32xf32>
    %99 = vector.extract_strided_slice %93 {offsets = [0, 32], sizes = [8, 32], strides = [1, 1]} : vector<8x128xf32> to vector<8x32xf32>
    %cst_34 = arith.constant 5.000000e-01 : f32
    %100 = vector.broadcast %cst_34 : f32 to vector<8x32xf32>
    %101 = arith.mulf %100, %99 : vector<8x32xf32>
    %cst_35 = arith.constant 5.000000e-01 : f32
    %102 = vector.broadcast %cst_35 : f32 to vector<8x32xf32>
    %103 = arith.addf %101, %102 : vector<8x32xf32>
    %104 = vector.extract_strided_slice %93 {offsets = [0, 64], sizes = [8, 32], strides = [1, 1]} : vector<8x128xf32> to vector<8x32xf32>
    %105 = vector.extract_strided_slice %93 {offsets = [0, 96], sizes = [8, 32], strides = [1, 1]} : vector<8x128xf32> to vector<8x32xf32>
    %cst_36 = arith.constant 5.000000e-01 : f32
    %106 = vector.broadcast %cst_36 : f32 to vector<8x32xf32>
    %107 = arith.mulf %106, %105 : vector<8x32xf32>
    %cst_37 = arith.constant 5.000000e-01 : f32
    %108 = vector.broadcast %cst_37 : f32 to vector<8x32xf32>
    %109 = arith.addf %107, %108 : vector<8x32xf32>
    %110 = arith.mulf %103, %58 : vector<8x32xf32>
    %111 = arith.mulf %98, %104 : vector<8x32xf32>
    %112 = arith.addf %110, %111 : vector<8x32xf32>
    %113 = math.tanh %112 : vector<8x32xf32>
    %114 = arith.mulf %109, %113 : vector<8x32xf32>
    %c2_i32 = arith.constant 2 : i32
    %115 = arith.index_cast %c2_i32 : i32 to index
    %c0_38 = arith.constant 0 : index
    %c0_39 = arith.constant 0 : index
    %116 = vector.load %arg0[%115, %c0_38, %c0_39] : memref<8x8x128xf32, #tpu.memory_space<vmem>>, vector<1x8x128xf32>
    %117 = vector.shape_cast %116 : vector<1x8x128xf32> to vector<8x128xf32>
    %118 = vector.extract_strided_slice %88 {offsets = [0, 0], sizes = [8, 128], strides = [1, 1]} : vector<8x256xf32> to vector<8x128xf32>
    %119 = arith.addf %117, %118 : vector<8x128xf32>
    %120 = math.tanh %119 : vector<8x128xf32>
    %121 = vector.extract_strided_slice %120 {offsets = [0, 0], sizes = [8, 32], strides = [1, 1]} : vector<8x128xf32> to vector<8x32xf32>
    %cst_40 = arith.constant 5.000000e-01 : f32
    %122 = vector.broadcast %cst_40 : f32 to vector<8x32xf32>
    %123 = arith.mulf %122, %121 : vector<8x32xf32>
    %cst_41 = arith.constant 5.000000e-01 : f32
    %124 = vector.broadcast %cst_41 : f32 to vector<8x32xf32>
    %125 = arith.addf %123, %124 : vector<8x32xf32>
    %126 = vector.extract_strided_slice %120 {offsets = [0, 32], sizes = [8, 32], strides = [1, 1]} : vector<8x128xf32> to vector<8x32xf32>
    %cst_42 = arith.constant 5.000000e-01 : f32
    %127 = vector.broadcast %cst_42 : f32 to vector<8x32xf32>
    %128 = arith.mulf %127, %126 : vector<8x32xf32>
    %cst_43 = arith.constant 5.000000e-01 : f32
    %129 = vector.broadcast %cst_43 : f32 to vector<8x32xf32>
    %130 = arith.addf %128, %129 : vector<8x32xf32>
    %131 = vector.extract_strided_slice %120 {offsets = [0, 64], sizes = [8, 32], strides = [1, 1]} : vector<8x128xf32> to vector<8x32xf32>
    %132 = vector.extract_strided_slice %120 {offsets = [0, 96], sizes = [8, 32], strides = [1, 1]} : vector<8x128xf32> to vector<8x32xf32>
    %cst_44 = arith.constant 5.000000e-01 : f32
    %133 = vector.broadcast %cst_44 : f32 to vector<8x32xf32>
    %134 = arith.mulf %133, %132 : vector<8x32xf32>
    %cst_45 = arith.constant 5.000000e-01 : f32
    %135 = vector.broadcast %cst_45 : f32 to vector<8x32xf32>
    %136 = arith.addf %134, %135 : vector<8x32xf32>
    %137 = arith.mulf %130, %85 : vector<8x32xf32>
    %138 = arith.mulf %125, %131 : vector<8x32xf32>
    %139 = arith.addf %137, %138 : vector<8x32xf32>
    %140 = math.tanh %139 : vector<8x32xf32>
    %141 = arith.mulf %136, %140 : vector<8x32xf32>
    %cst_46 = arith.constant dense<0.000000e+00> : vector<8x256xf32>
    %142 = tpu.matmul %141, %0, %cst_46 {dimension_numbers = #tpu.dot_dimension_numbers<[1], [0], [0], [1], [0, 0, 1, 1], [], []>} : vector<8x32xf32>, vector<32x256xf32>, vector<8x256xf32> -> vector<8x256xf32>
    %143 = vector.extract_strided_slice %142 {offsets = [0, 128], sizes = [8, 128], strides = [1, 1]} : vector<8x256xf32> to vector<8x128xf32>
    %cst_47 = arith.constant dense<0.000000e+00> : vector<8x128xf32>
    %144 = tpu.matmul %114, %1, %cst_47 {dimension_numbers = #tpu.dot_dimension_numbers<[1], [0], [0], [1], [0, 0, 1, 1], [], []>} : vector<8x32xf32>, vector<32x128xf32>, vector<8x128xf32> -> vector<8x128xf32>
    %145 = arith.addf %143, %144 : vector<8x128xf32>
    %146 = arith.addf %145, %4 : vector<8x128xf32>
    %147 = math.tanh %146 : vector<8x128xf32>
    %148 = vector.extract_strided_slice %147 {offsets = [0, 0], sizes = [8, 32], strides = [1, 1]} : vector<8x128xf32> to vector<8x32xf32>
    %cst_48 = arith.constant 5.000000e-01 : f32
    %149 = vector.broadcast %cst_48 : f32 to vector<8x32xf32>
    %150 = arith.mulf %149, %148 : vector<8x32xf32>
    %cst_49 = arith.constant 5.000000e-01 : f32
    %151 = vector.broadcast %cst_49 : f32 to vector<8x32xf32>
    %152 = arith.addf %150, %151 : vector<8x32xf32>
    %153 = vector.extract_strided_slice %147 {offsets = [0, 32], sizes = [8, 32], strides = [1, 1]} : vector<8x128xf32> to vector<8x32xf32>
    %cst_50 = arith.constant 5.000000e-01 : f32
    %154 = vector.broadcast %cst_50 : f32 to vector<8x32xf32>
    %155 = arith.mulf %154, %153 : vector<8x32xf32>
    %cst_51 = arith.constant 5.000000e-01 : f32
    %156 = vector.broadcast %cst_51 : f32 to vector<8x32xf32>
    %157 = arith.addf %155, %156 : vector<8x32xf32>
    %158 = vector.extract_strided_slice %147 {offsets = [0, 64], sizes = [8, 32], strides = [1, 1]} : vector<8x128xf32> to vector<8x32xf32>
    %159 = vector.extract_strided_slice %147 {offsets = [0, 96], sizes = [8, 32], strides = [1, 1]} : vector<8x128xf32> to vector<8x32xf32>
    %cst_52 = arith.constant 5.000000e-01 : f32
    %160 = vector.broadcast %cst_52 : f32 to vector<8x32xf32>
    %161 = arith.mulf %160, %159 : vector<8x32xf32>
    %cst_53 = arith.constant 5.000000e-01 : f32
    %162 = vector.broadcast %cst_53 : f32 to vector<8x32xf32>
    %163 = arith.addf %161, %162 : vector<8x32xf32>
    %164 = arith.mulf %157, %112 : vector<8x32xf32>
    %165 = arith.mulf %152, %158 : vector<8x32xf32>
    %166 = arith.addf %164, %165 : vector<8x32xf32>
    %167 = math.tanh %166 : vector<8x32xf32>
    %168 = arith.mulf %163, %167 : vector<8x32xf32>
    %c3_i32 = arith.constant 3 : i32
    %169 = arith.index_cast %c3_i32 : i32 to index
    %c0_54 = arith.constant 0 : index
    %c0_55 = arith.constant 0 : index
    %170 = vector.load %arg0[%169, %c0_54, %c0_55] : memref<8x8x128xf32, #tpu.memory_space<vmem>>, vector<1x8x128xf32>
    %171 = vector.shape_cast %170 : vector<1x8x128xf32> to vector<8x128xf32>
    %172 = vector.extract_strided_slice %142 {offsets = [0, 0], sizes = [8, 128], strides = [1, 1]} : vector<8x256xf32> to vector<8x128xf32>
    %173 = arith.addf %171, %172 : vector<8x128xf32>
    %174 = math.tanh %173 : vector<8x128xf32>
    %175 = vector.extract_strided_slice %174 {offsets = [0, 0], sizes = [8, 32], strides = [1, 1]} : vector<8x128xf32> to vector<8x32xf32>
    %cst_56 = arith.constant 5.000000e-01 : f32
    %176 = vector.broadcast %cst_56 : f32 to vector<8x32xf32>
    %177 = arith.mulf %176, %175 : vector<8x32xf32>
    %cst_57 = arith.constant 5.000000e-01 : f32
    %178 = vector.broadcast %cst_57 : f32 to vector<8x32xf32>
    %179 = arith.addf %177, %178 : vector<8x32xf32>
    %180 = vector.extract_strided_slice %174 {offsets = [0, 32], sizes = [8, 32], strides = [1, 1]} : vector<8x128xf32> to vector<8x32xf32>
    %cst_58 = arith.constant 5.000000e-01 : f32
    %181 = vector.broadcast %cst_58 : f32 to vector<8x32xf32>
    %182 = arith.mulf %181, %180 : vector<8x32xf32>
    %cst_59 = arith.constant 5.000000e-01 : f32
    %183 = vector.broadcast %cst_59 : f32 to vector<8x32xf32>
    %184 = arith.addf %182, %183 : vector<8x32xf32>
    %185 = vector.extract_strided_slice %174 {offsets = [0, 64], sizes = [8, 32], strides = [1, 1]} : vector<8x128xf32> to vector<8x32xf32>
    %186 = vector.extract_strided_slice %174 {offsets = [0, 96], sizes = [8, 32], strides = [1, 1]} : vector<8x128xf32> to vector<8x32xf32>
    %cst_60 = arith.constant 5.000000e-01 : f32
    %187 = vector.broadcast %cst_60 : f32 to vector<8x32xf32>
    %188 = arith.mulf %187, %186 : vector<8x32xf32>
    %cst_61 = arith.constant 5.000000e-01 : f32
    %189 = vector.broadcast %cst_61 : f32 to vector<8x32xf32>
    %190 = arith.addf %188, %189 : vector<8x32xf32>
    %191 = arith.mulf %184, %139 : vector<8x32xf32>
    %192 = arith.mulf %179, %185 : vector<8x32xf32>
    %193 = arith.addf %191, %192 : vector<8x32xf32>
    %194 = math.tanh %193 : vector<8x32xf32>
    %195 = arith.mulf %190, %194 : vector<8x32xf32>
    %cst_62 = arith.constant dense<0.000000e+00> : vector<8x256xf32>
    %196 = tpu.matmul %195, %0, %cst_62 {dimension_numbers = #tpu.dot_dimension_numbers<[1], [0], [0], [1], [0, 0, 1, 1], [], []>} : vector<8x32xf32>, vector<32x256xf32>, vector<8x256xf32> -> vector<8x256xf32>
    %197 = vector.extract_strided_slice %196 {offsets = [0, 128], sizes = [8, 128], strides = [1, 1]} : vector<8x256xf32> to vector<8x128xf32>
    %cst_63 = arith.constant dense<0.000000e+00> : vector<8x128xf32>
    %198 = tpu.matmul %168, %1, %cst_63 {dimension_numbers = #tpu.dot_dimension_numbers<[1], [0], [0], [1], [0, 0, 1, 1], [], []>} : vector<8x32xf32>, vector<32x128xf32>, vector<8x128xf32> -> vector<8x128xf32>
    %199 = arith.addf %197, %198 : vector<8x128xf32>
    %200 = arith.addf %199, %4 : vector<8x128xf32>
    %201 = math.tanh %200 : vector<8x128xf32>
    %202 = vector.extract_strided_slice %201 {offsets = [0, 0], sizes = [8, 32], strides = [1, 1]} : vector<8x128xf32> to vector<8x32xf32>
    %cst_64 = arith.constant 5.000000e-01 : f32
    %203 = vector.broadcast %cst_64 : f32 to vector<8x32xf32>
    %204 = arith.mulf %203, %202 : vector<8x32xf32>
    %cst_65 = arith.constant 5.000000e-01 : f32
    %205 = vector.broadcast %cst_65 : f32 to vector<8x32xf32>
    %206 = arith.addf %204, %205 : vector<8x32xf32>
    %207 = vector.extract_strided_slice %201 {offsets = [0, 32], sizes = [8, 32], strides = [1, 1]} : vector<8x128xf32> to vector<8x32xf32>
    %cst_66 = arith.constant 5.000000e-01 : f32
    %208 = vector.broadcast %cst_66 : f32 to vector<8x32xf32>
    %209 = arith.mulf %208, %207 : vector<8x32xf32>
    %cst_67 = arith.constant 5.000000e-01 : f32
    %210 = vector.broadcast %cst_67 : f32 to vector<8x32xf32>
    %211 = arith.addf %209, %210 : vector<8x32xf32>
    %212 = vector.extract_strided_slice %201 {offsets = [0, 64], sizes = [8, 32], strides = [1, 1]} : vector<8x128xf32> to vector<8x32xf32>
    %213 = vector.extract_strided_slice %201 {offsets = [0, 96], sizes = [8, 32], strides = [1, 1]} : vector<8x128xf32> to vector<8x32xf32>
    %cst_68 = arith.constant 5.000000e-01 : f32
    %214 = vector.broadcast %cst_68 : f32 to vector<8x32xf32>
    %215 = arith.mulf %214, %213 : vector<8x32xf32>
    %cst_69 = arith.constant 5.000000e-01 : f32
    %216 = vector.broadcast %cst_69 : f32 to vector<8x32xf32>
    %217 = arith.addf %215, %216 : vector<8x32xf32>
    %218 = arith.mulf %211, %166 : vector<8x32xf32>
    %219 = arith.mulf %206, %212 : vector<8x32xf32>
    %220 = arith.addf %218, %219 : vector<8x32xf32>
    %221 = math.tanh %220 : vector<8x32xf32>
    %222 = arith.mulf %217, %221 : vector<8x32xf32>
    %c4_i32 = arith.constant 4 : i32
    %223 = arith.index_cast %c4_i32 : i32 to index
    %c0_70 = arith.constant 0 : index
    %c0_71 = arith.constant 0 : index
    %224 = vector.load %arg0[%223, %c0_70, %c0_71] : memref<8x8x128xf32, #tpu.memory_space<vmem>>, vector<1x8x128xf32>
    %225 = vector.shape_cast %224 : vector<1x8x128xf32> to vector<8x128xf32>
    %226 = vector.extract_strided_slice %196 {offsets = [0, 0], sizes = [8, 128], strides = [1, 1]} : vector<8x256xf32> to vector<8x128xf32>
    %227 = arith.addf %225, %226 : vector<8x128xf32>
    %228 = math.tanh %227 : vector<8x128xf32>
    %229 = vector.extract_strided_slice %228 {offsets = [0, 0], sizes = [8, 32], strides = [1, 1]} : vector<8x128xf32> to vector<8x32xf32>
    %cst_72 = arith.constant 5.000000e-01 : f32
    %230 = vector.broadcast %cst_72 : f32 to vector<8x32xf32>
    %231 = arith.mulf %230, %229 : vector<8x32xf32>
    %cst_73 = arith.constant 5.000000e-01 : f32
    %232 = vector.broadcast %cst_73 : f32 to vector<8x32xf32>
    %233 = arith.addf %231, %232 : vector<8x32xf32>
    %234 = vector.extract_strided_slice %228 {offsets = [0, 32], sizes = [8, 32], strides = [1, 1]} : vector<8x128xf32> to vector<8x32xf32>
    %cst_74 = arith.constant 5.000000e-01 : f32
    %235 = vector.broadcast %cst_74 : f32 to vector<8x32xf32>
    %236 = arith.mulf %235, %234 : vector<8x32xf32>
    %cst_75 = arith.constant 5.000000e-01 : f32
    %237 = vector.broadcast %cst_75 : f32 to vector<8x32xf32>
    %238 = arith.addf %236, %237 : vector<8x32xf32>
    %239 = vector.extract_strided_slice %228 {offsets = [0, 64], sizes = [8, 32], strides = [1, 1]} : vector<8x128xf32> to vector<8x32xf32>
    %240 = vector.extract_strided_slice %228 {offsets = [0, 96], sizes = [8, 32], strides = [1, 1]} : vector<8x128xf32> to vector<8x32xf32>
    %cst_76 = arith.constant 5.000000e-01 : f32
    %241 = vector.broadcast %cst_76 : f32 to vector<8x32xf32>
    %242 = arith.mulf %241, %240 : vector<8x32xf32>
    %cst_77 = arith.constant 5.000000e-01 : f32
    %243 = vector.broadcast %cst_77 : f32 to vector<8x32xf32>
    %244 = arith.addf %242, %243 : vector<8x32xf32>
    %245 = arith.mulf %238, %193 : vector<8x32xf32>
    %246 = arith.mulf %233, %239 : vector<8x32xf32>
    %247 = arith.addf %245, %246 : vector<8x32xf32>
    %248 = math.tanh %247 : vector<8x32xf32>
    %249 = arith.mulf %244, %248 : vector<8x32xf32>
    %cst_78 = arith.constant dense<0.000000e+00> : vector<8x256xf32>
    %250 = tpu.matmul %249, %0, %cst_78 {dimension_numbers = #tpu.dot_dimension_numbers<[1], [0], [0], [1], [0, 0, 1, 1], [], []>} : vector<8x32xf32>, vector<32x256xf32>, vector<8x256xf32> -> vector<8x256xf32>
    %251 = vector.extract_strided_slice %250 {offsets = [0, 128], sizes = [8, 128], strides = [1, 1]} : vector<8x256xf32> to vector<8x128xf32>
    %cst_79 = arith.constant dense<0.000000e+00> : vector<8x128xf32>
    %252 = tpu.matmul %222, %1, %cst_79 {dimension_numbers = #tpu.dot_dimension_numbers<[1], [0], [0], [1], [0, 0, 1, 1], [], []>} : vector<8x32xf32>, vector<32x128xf32>, vector<8x128xf32> -> vector<8x128xf32>
    %253 = arith.addf %251, %252 : vector<8x128xf32>
    %254 = arith.addf %253, %4 : vector<8x128xf32>
    %255 = math.tanh %254 : vector<8x128xf32>
    %256 = vector.extract_strided_slice %255 {offsets = [0, 0], sizes = [8, 32], strides = [1, 1]} : vector<8x128xf32> to vector<8x32xf32>
    %cst_80 = arith.constant 5.000000e-01 : f32
    %257 = vector.broadcast %cst_80 : f32 to vector<8x32xf32>
    %258 = arith.mulf %257, %256 : vector<8x32xf32>
    %cst_81 = arith.constant 5.000000e-01 : f32
    %259 = vector.broadcast %cst_81 : f32 to vector<8x32xf32>
    %260 = arith.addf %258, %259 : vector<8x32xf32>
    %261 = vector.extract_strided_slice %255 {offsets = [0, 32], sizes = [8, 32], strides = [1, 1]} : vector<8x128xf32> to vector<8x32xf32>
    %cst_82 = arith.constant 5.000000e-01 : f32
    %262 = vector.broadcast %cst_82 : f32 to vector<8x32xf32>
    %263 = arith.mulf %262, %261 : vector<8x32xf32>
    %cst_83 = arith.constant 5.000000e-01 : f32
    %264 = vector.broadcast %cst_83 : f32 to vector<8x32xf32>
    %265 = arith.addf %263, %264 : vector<8x32xf32>
    %266 = vector.extract_strided_slice %255 {offsets = [0, 64], sizes = [8, 32], strides = [1, 1]} : vector<8x128xf32> to vector<8x32xf32>
    %267 = vector.extract_strided_slice %255 {offsets = [0, 96], sizes = [8, 32], strides = [1, 1]} : vector<8x128xf32> to vector<8x32xf32>
    %cst_84 = arith.constant 5.000000e-01 : f32
    %268 = vector.broadcast %cst_84 : f32 to vector<8x32xf32>
    %269 = arith.mulf %268, %267 : vector<8x32xf32>
    %cst_85 = arith.constant 5.000000e-01 : f32
    %270 = vector.broadcast %cst_85 : f32 to vector<8x32xf32>
    %271 = arith.addf %269, %270 : vector<8x32xf32>
    %272 = arith.mulf %265, %220 : vector<8x32xf32>
    %273 = arith.mulf %260, %266 : vector<8x32xf32>
    %274 = arith.addf %272, %273 : vector<8x32xf32>
    %275 = math.tanh %274 : vector<8x32xf32>
    %276 = arith.mulf %271, %275 : vector<8x32xf32>
    %c5_i32 = arith.constant 5 : i32
    %277 = arith.index_cast %c5_i32 : i32 to index
    %c0_86 = arith.constant 0 : index
    %c0_87 = arith.constant 0 : index
    %278 = vector.load %arg0[%277, %c0_86, %c0_87] : memref<8x8x128xf32, #tpu.memory_space<vmem>>, vector<1x8x128xf32>
    %279 = vector.shape_cast %278 : vector<1x8x128xf32> to vector<8x128xf32>
    %280 = vector.extract_strided_slice %250 {offsets = [0, 0], sizes = [8, 128], strides = [1, 1]} : vector<8x256xf32> to vector<8x128xf32>
    %281 = arith.addf %279, %280 : vector<8x128xf32>
    %282 = math.tanh %281 : vector<8x128xf32>
    %283 = vector.extract_strided_slice %282 {offsets = [0, 0], sizes = [8, 32], strides = [1, 1]} : vector<8x128xf32> to vector<8x32xf32>
    %cst_88 = arith.constant 5.000000e-01 : f32
    %284 = vector.broadcast %cst_88 : f32 to vector<8x32xf32>
    %285 = arith.mulf %284, %283 : vector<8x32xf32>
    %cst_89 = arith.constant 5.000000e-01 : f32
    %286 = vector.broadcast %cst_89 : f32 to vector<8x32xf32>
    %287 = arith.addf %285, %286 : vector<8x32xf32>
    %288 = vector.extract_strided_slice %282 {offsets = [0, 32], sizes = [8, 32], strides = [1, 1]} : vector<8x128xf32> to vector<8x32xf32>
    %cst_90 = arith.constant 5.000000e-01 : f32
    %289 = vector.broadcast %cst_90 : f32 to vector<8x32xf32>
    %290 = arith.mulf %289, %288 : vector<8x32xf32>
    %cst_91 = arith.constant 5.000000e-01 : f32
    %291 = vector.broadcast %cst_91 : f32 to vector<8x32xf32>
    %292 = arith.addf %290, %291 : vector<8x32xf32>
    %293 = vector.extract_strided_slice %282 {offsets = [0, 64], sizes = [8, 32], strides = [1, 1]} : vector<8x128xf32> to vector<8x32xf32>
    %294 = vector.extract_strided_slice %282 {offsets = [0, 96], sizes = [8, 32], strides = [1, 1]} : vector<8x128xf32> to vector<8x32xf32>
    %cst_92 = arith.constant 5.000000e-01 : f32
    %295 = vector.broadcast %cst_92 : f32 to vector<8x32xf32>
    %296 = arith.mulf %295, %294 : vector<8x32xf32>
    %cst_93 = arith.constant 5.000000e-01 : f32
    %297 = vector.broadcast %cst_93 : f32 to vector<8x32xf32>
    %298 = arith.addf %296, %297 : vector<8x32xf32>
    %299 = arith.mulf %292, %247 : vector<8x32xf32>
    %300 = arith.mulf %287, %293 : vector<8x32xf32>
    %301 = arith.addf %299, %300 : vector<8x32xf32>
    %302 = math.tanh %301 : vector<8x32xf32>
    %303 = arith.mulf %298, %302 : vector<8x32xf32>
    %cst_94 = arith.constant dense<0.000000e+00> : vector<8x256xf32>
    %304 = tpu.matmul %303, %0, %cst_94 {dimension_numbers = #tpu.dot_dimension_numbers<[1], [0], [0], [1], [0, 0, 1, 1], [], []>} : vector<8x32xf32>, vector<32x256xf32>, vector<8x256xf32> -> vector<8x256xf32>
    %305 = vector.extract_strided_slice %304 {offsets = [0, 128], sizes = [8, 128], strides = [1, 1]} : vector<8x256xf32> to vector<8x128xf32>
    %cst_95 = arith.constant dense<0.000000e+00> : vector<8x128xf32>
    %306 = tpu.matmul %276, %1, %cst_95 {dimension_numbers = #tpu.dot_dimension_numbers<[1], [0], [0], [1], [0, 0, 1, 1], [], []>} : vector<8x32xf32>, vector<32x128xf32>, vector<8x128xf32> -> vector<8x128xf32>
    %307 = arith.addf %305, %306 : vector<8x128xf32>
    %308 = arith.addf %307, %4 : vector<8x128xf32>
    %309 = math.tanh %308 : vector<8x128xf32>
    %310 = vector.extract_strided_slice %309 {offsets = [0, 0], sizes = [8, 32], strides = [1, 1]} : vector<8x128xf32> to vector<8x32xf32>
    %cst_96 = arith.constant 5.000000e-01 : f32
    %311 = vector.broadcast %cst_96 : f32 to vector<8x32xf32>
    %312 = arith.mulf %311, %310 : vector<8x32xf32>
    %cst_97 = arith.constant 5.000000e-01 : f32
    %313 = vector.broadcast %cst_97 : f32 to vector<8x32xf32>
    %314 = arith.addf %312, %313 : vector<8x32xf32>
    %315 = vector.extract_strided_slice %309 {offsets = [0, 32], sizes = [8, 32], strides = [1, 1]} : vector<8x128xf32> to vector<8x32xf32>
    %cst_98 = arith.constant 5.000000e-01 : f32
    %316 = vector.broadcast %cst_98 : f32 to vector<8x32xf32>
    %317 = arith.mulf %316, %315 : vector<8x32xf32>
    %cst_99 = arith.constant 5.000000e-01 : f32
    %318 = vector.broadcast %cst_99 : f32 to vector<8x32xf32>
    %319 = arith.addf %317, %318 : vector<8x32xf32>
    %320 = vector.extract_strided_slice %309 {offsets = [0, 64], sizes = [8, 32], strides = [1, 1]} : vector<8x128xf32> to vector<8x32xf32>
    %321 = vector.extract_strided_slice %309 {offsets = [0, 96], sizes = [8, 32], strides = [1, 1]} : vector<8x128xf32> to vector<8x32xf32>
    %cst_100 = arith.constant 5.000000e-01 : f32
    %322 = vector.broadcast %cst_100 : f32 to vector<8x32xf32>
    %323 = arith.mulf %322, %321 : vector<8x32xf32>
    %cst_101 = arith.constant 5.000000e-01 : f32
    %324 = vector.broadcast %cst_101 : f32 to vector<8x32xf32>
    %325 = arith.addf %323, %324 : vector<8x32xf32>
    %326 = arith.mulf %319, %274 : vector<8x32xf32>
    %327 = arith.mulf %314, %320 : vector<8x32xf32>
    %328 = arith.addf %326, %327 : vector<8x32xf32>
    %329 = math.tanh %328 : vector<8x32xf32>
    %330 = arith.mulf %325, %329 : vector<8x32xf32>
    %c6_i32 = arith.constant 6 : i32
    %331 = arith.index_cast %c6_i32 : i32 to index
    %c0_102 = arith.constant 0 : index
    %c0_103 = arith.constant 0 : index
    %332 = vector.load %arg0[%331, %c0_102, %c0_103] : memref<8x8x128xf32, #tpu.memory_space<vmem>>, vector<1x8x128xf32>
    %333 = vector.shape_cast %332 : vector<1x8x128xf32> to vector<8x128xf32>
    %334 = vector.extract_strided_slice %304 {offsets = [0, 0], sizes = [8, 128], strides = [1, 1]} : vector<8x256xf32> to vector<8x128xf32>
    %335 = arith.addf %333, %334 : vector<8x128xf32>
    %336 = math.tanh %335 : vector<8x128xf32>
    %337 = vector.extract_strided_slice %336 {offsets = [0, 0], sizes = [8, 32], strides = [1, 1]} : vector<8x128xf32> to vector<8x32xf32>
    %cst_104 = arith.constant 5.000000e-01 : f32
    %338 = vector.broadcast %cst_104 : f32 to vector<8x32xf32>
    %339 = arith.mulf %338, %337 : vector<8x32xf32>
    %cst_105 = arith.constant 5.000000e-01 : f32
    %340 = vector.broadcast %cst_105 : f32 to vector<8x32xf32>
    %341 = arith.addf %339, %340 : vector<8x32xf32>
    %342 = vector.extract_strided_slice %336 {offsets = [0, 32], sizes = [8, 32], strides = [1, 1]} : vector<8x128xf32> to vector<8x32xf32>
    %cst_106 = arith.constant 5.000000e-01 : f32
    %343 = vector.broadcast %cst_106 : f32 to vector<8x32xf32>
    %344 = arith.mulf %343, %342 : vector<8x32xf32>
    %cst_107 = arith.constant 5.000000e-01 : f32
    %345 = vector.broadcast %cst_107 : f32 to vector<8x32xf32>
    %346 = arith.addf %344, %345 : vector<8x32xf32>
    %347 = vector.extract_strided_slice %336 {offsets = [0, 64], sizes = [8, 32], strides = [1, 1]} : vector<8x128xf32> to vector<8x32xf32>
    %348 = vector.extract_strided_slice %336 {offsets = [0, 96], sizes = [8, 32], strides = [1, 1]} : vector<8x128xf32> to vector<8x32xf32>
    %cst_108 = arith.constant 5.000000e-01 : f32
    %349 = vector.broadcast %cst_108 : f32 to vector<8x32xf32>
    %350 = arith.mulf %349, %348 : vector<8x32xf32>
    %cst_109 = arith.constant 5.000000e-01 : f32
    %351 = vector.broadcast %cst_109 : f32 to vector<8x32xf32>
    %352 = arith.addf %350, %351 : vector<8x32xf32>
    %353 = arith.mulf %346, %301 : vector<8x32xf32>
    %354 = arith.mulf %341, %347 : vector<8x32xf32>
    %355 = arith.addf %353, %354 : vector<8x32xf32>
    %356 = math.tanh %355 : vector<8x32xf32>
    %357 = arith.mulf %352, %356 : vector<8x32xf32>
    %cst_110 = arith.constant dense<0.000000e+00> : vector<8x256xf32>
    %358 = tpu.matmul %357, %0, %cst_110 {dimension_numbers = #tpu.dot_dimension_numbers<[1], [0], [0], [1], [0, 0, 1, 1], [], []>} : vector<8x32xf32>, vector<32x256xf32>, vector<8x256xf32> -> vector<8x256xf32>
    %359 = vector.extract_strided_slice %358 {offsets = [0, 128], sizes = [8, 128], strides = [1, 1]} : vector<8x256xf32> to vector<8x128xf32>
    %cst_111 = arith.constant dense<0.000000e+00> : vector<8x128xf32>
    %360 = tpu.matmul %330, %1, %cst_111 {dimension_numbers = #tpu.dot_dimension_numbers<[1], [0], [0], [1], [0, 0, 1, 1], [], []>} : vector<8x32xf32>, vector<32x128xf32>, vector<8x128xf32> -> vector<8x128xf32>
    %361 = arith.addf %359, %360 : vector<8x128xf32>
    %362 = arith.addf %361, %4 : vector<8x128xf32>
    %363 = math.tanh %362 : vector<8x128xf32>
    %364 = vector.extract_strided_slice %363 {offsets = [0, 0], sizes = [8, 32], strides = [1, 1]} : vector<8x128xf32> to vector<8x32xf32>
    %cst_112 = arith.constant 5.000000e-01 : f32
    %365 = vector.broadcast %cst_112 : f32 to vector<8x32xf32>
    %366 = arith.mulf %365, %364 : vector<8x32xf32>
    %cst_113 = arith.constant 5.000000e-01 : f32
    %367 = vector.broadcast %cst_113 : f32 to vector<8x32xf32>
    %368 = arith.addf %366, %367 : vector<8x32xf32>
    %369 = vector.extract_strided_slice %363 {offsets = [0, 32], sizes = [8, 32], strides = [1, 1]} : vector<8x128xf32> to vector<8x32xf32>
    %cst_114 = arith.constant 5.000000e-01 : f32
    %370 = vector.broadcast %cst_114 : f32 to vector<8x32xf32>
    %371 = arith.mulf %370, %369 : vector<8x32xf32>
    %cst_115 = arith.constant 5.000000e-01 : f32
    %372 = vector.broadcast %cst_115 : f32 to vector<8x32xf32>
    %373 = arith.addf %371, %372 : vector<8x32xf32>
    %374 = vector.extract_strided_slice %363 {offsets = [0, 64], sizes = [8, 32], strides = [1, 1]} : vector<8x128xf32> to vector<8x32xf32>
    %375 = vector.extract_strided_slice %363 {offsets = [0, 96], sizes = [8, 32], strides = [1, 1]} : vector<8x128xf32> to vector<8x32xf32>
    %cst_116 = arith.constant 5.000000e-01 : f32
    %376 = vector.broadcast %cst_116 : f32 to vector<8x32xf32>
    %377 = arith.mulf %376, %375 : vector<8x32xf32>
    %cst_117 = arith.constant 5.000000e-01 : f32
    %378 = vector.broadcast %cst_117 : f32 to vector<8x32xf32>
    %379 = arith.addf %377, %378 : vector<8x32xf32>
    %380 = arith.mulf %373, %328 : vector<8x32xf32>
    %381 = arith.mulf %368, %374 : vector<8x32xf32>
    %382 = arith.addf %380, %381 : vector<8x32xf32>
    %383 = math.tanh %382 : vector<8x32xf32>
    %384 = arith.mulf %379, %383 : vector<8x32xf32>
    %c7_i32 = arith.constant 7 : i32
    %385 = arith.index_cast %c7_i32 : i32 to index
    %c0_118 = arith.constant 0 : index
    %c0_119 = arith.constant 0 : index
    %386 = vector.load %arg0[%385, %c0_118, %c0_119] : memref<8x8x128xf32, #tpu.memory_space<vmem>>, vector<1x8x128xf32>
    %387 = vector.shape_cast %386 : vector<1x8x128xf32> to vector<8x128xf32>
    %388 = vector.extract_strided_slice %358 {offsets = [0, 0], sizes = [8, 128], strides = [1, 1]} : vector<8x256xf32> to vector<8x128xf32>
    %389 = arith.addf %387, %388 : vector<8x128xf32>
    %390 = math.tanh %389 : vector<8x128xf32>
    %391 = vector.extract_strided_slice %390 {offsets = [0, 0], sizes = [8, 32], strides = [1, 1]} : vector<8x128xf32> to vector<8x32xf32>
    %cst_120 = arith.constant 5.000000e-01 : f32
    %392 = vector.broadcast %cst_120 : f32 to vector<8x32xf32>
    %393 = arith.mulf %392, %391 : vector<8x32xf32>
    %cst_121 = arith.constant 5.000000e-01 : f32
    %394 = vector.broadcast %cst_121 : f32 to vector<8x32xf32>
    %395 = arith.addf %393, %394 : vector<8x32xf32>
    %396 = vector.extract_strided_slice %390 {offsets = [0, 32], sizes = [8, 32], strides = [1, 1]} : vector<8x128xf32> to vector<8x32xf32>
    %cst_122 = arith.constant 5.000000e-01 : f32
    %397 = vector.broadcast %cst_122 : f32 to vector<8x32xf32>
    %398 = arith.mulf %397, %396 : vector<8x32xf32>
    %cst_123 = arith.constant 5.000000e-01 : f32
    %399 = vector.broadcast %cst_123 : f32 to vector<8x32xf32>
    %400 = arith.addf %398, %399 : vector<8x32xf32>
    %401 = vector.extract_strided_slice %390 {offsets = [0, 64], sizes = [8, 32], strides = [1, 1]} : vector<8x128xf32> to vector<8x32xf32>
    %402 = vector.extract_strided_slice %390 {offsets = [0, 96], sizes = [8, 32], strides = [1, 1]} : vector<8x128xf32> to vector<8x32xf32>
    %cst_124 = arith.constant 5.000000e-01 : f32
    %403 = vector.broadcast %cst_124 : f32 to vector<8x32xf32>
    %404 = arith.mulf %403, %402 : vector<8x32xf32>
    %cst_125 = arith.constant 5.000000e-01 : f32
    %405 = vector.broadcast %cst_125 : f32 to vector<8x32xf32>
    %406 = arith.addf %404, %405 : vector<8x32xf32>
    %407 = arith.mulf %400, %355 : vector<8x32xf32>
    %408 = arith.mulf %395, %401 : vector<8x32xf32>
    %409 = arith.addf %407, %408 : vector<8x32xf32>
    %410 = math.tanh %409 : vector<8x32xf32>
    %411 = arith.mulf %406, %410 : vector<8x32xf32>
    %cst_126 = arith.constant dense<0.000000e+00> : vector<8x256xf32>
    %412 = tpu.matmul %411, %0, %cst_126 {dimension_numbers = #tpu.dot_dimension_numbers<[1], [0], [0], [1], [0, 0, 1, 1], [], []>} : vector<8x32xf32>, vector<32x256xf32>, vector<8x256xf32> -> vector<8x256xf32>
    %413 = vector.extract_strided_slice %412 {offsets = [0, 128], sizes = [8, 128], strides = [1, 1]} : vector<8x256xf32> to vector<8x128xf32>
    %cst_127 = arith.constant dense<0.000000e+00> : vector<8x128xf32>
    %414 = tpu.matmul %384, %1, %cst_127 {dimension_numbers = #tpu.dot_dimension_numbers<[1], [0], [0], [1], [0, 0, 1, 1], [], []>} : vector<8x32xf32>, vector<32x128xf32>, vector<8x128xf32> -> vector<8x128xf32>
    %415 = arith.addf %413, %414 : vector<8x128xf32>
    %416 = arith.addf %415, %4 : vector<8x128xf32>
    %417 = math.tanh %416 : vector<8x128xf32>
    %418 = vector.extract_strided_slice %417 {offsets = [0, 0], sizes = [8, 32], strides = [1, 1]} : vector<8x128xf32> to vector<8x32xf32>
    %cst_128 = arith.constant 5.000000e-01 : f32
    %419 = vector.broadcast %cst_128 : f32 to vector<8x32xf32>
    %420 = arith.mulf %419, %418 : vector<8x32xf32>
    %cst_129 = arith.constant 5.000000e-01 : f32
    %421 = vector.broadcast %cst_129 : f32 to vector<8x32xf32>
    %422 = arith.addf %420, %421 : vector<8x32xf32>
    %423 = vector.extract_strided_slice %417 {offsets = [0, 32], sizes = [8, 32], strides = [1, 1]} : vector<8x128xf32> to vector<8x32xf32>
    %cst_130 = arith.constant 5.000000e-01 : f32
    %424 = vector.broadcast %cst_130 : f32 to vector<8x32xf32>
    %425 = arith.mulf %424, %423 : vector<8x32xf32>
    %cst_131 = arith.constant 5.000000e-01 : f32
    %426 = vector.broadcast %cst_131 : f32 to vector<8x32xf32>
    %427 = arith.addf %425, %426 : vector<8x32xf32>
    %428 = vector.extract_strided_slice %417 {offsets = [0, 64], sizes = [8, 32], strides = [1, 1]} : vector<8x128xf32> to vector<8x32xf32>
    %429 = vector.extract_strided_slice %417 {offsets = [0, 96], sizes = [8, 32], strides = [1, 1]} : vector<8x128xf32> to vector<8x32xf32>
    %cst_132 = arith.constant 5.000000e-01 : f32
    %430 = vector.broadcast %cst_132 : f32 to vector<8x32xf32>
    %431 = arith.mulf %430, %429 : vector<8x32xf32>
    %cst_133 = arith.constant 5.000000e-01 : f32
    %432 = vector.broadcast %cst_133 : f32 to vector<8x32xf32>
    %433 = arith.addf %431, %432 : vector<8x32xf32>
    %434 = arith.mulf %427, %382 : vector<8x32xf32>
    %435 = arith.mulf %422, %428 : vector<8x32xf32>
    %436 = arith.addf %434, %435 : vector<8x32xf32>
    %437 = math.tanh %436 : vector<8x32xf32>
    %438 = arith.mulf %433, %437 : vector<8x32xf32>
    %c8_i32 = arith.constant 8 : i32
    %c0_134 = arith.constant 0 : index
    %c0_135 = arith.constant 0 : index
    %439 = vector.load %arg4[%c0_134, %c0_135] : memref<32x1xf32, #tpu.memory_space<vmem>>, vector<32x1xf32>
    %cst_136 = arith.constant dense<0.000000e+00> : vector<8x1xf32>
    %440 = tpu.matmul %438, %439, %cst_136 {dimension_numbers = #tpu.dot_dimension_numbers<[1], [0], [0], [1], [0, 0, 1, 1], [], []>} : vector<8x32xf32>, vector<32x1xf32>, vector<8x1xf32> -> vector<8x1xf32>
    %c0_137 = arith.constant 0 : index
    %c0_138 = arith.constant 0 : index
    %441 = vector.load %arg5[%c0_137, %c0_138] : memref<1x1xf32, #tpu.memory_space<vmem>>, vector<1x1xf32>
    %442 = vector.broadcast %441 : vector<1x1xf32> to vector<8x1xf32>
    %443 = arith.addf %440, %442 : vector<8x1xf32>
    %c0_139 = arith.constant 0 : index
    %c0_140 = arith.constant 0 : index
    %444 = vector.load %arg6[%c0_139, %c0_140] : memref<8x1xf32, #tpu.memory_space<vmem>>, vector<8x1xf32>
    tpu.vector_store %arg6[%c0_139, %c0_140], %443 {strides = array<i32>} : memref<8x1xf32, #tpu.memory_space<vmem>>, vector<8x1xf32>,
    return
  }
}

</mosaic_0001>

<bundles_post_ra>
// kernel: lstm_timeseries_forward.1
= control target key start
LH: loop header
LB: loop body
LE: loop exit
PB: predicated region body
PF: predicated region fallthrough
CT: control target
= control target key end

     0   :  { %s1077_s23 = smov 64   ;;  %s1078_s24 = smov 32   ;;  %v1079_v22 = vmov 0.0   ;;  %vm66_vm0 = vcmask 261120   ;;  %vm972_vm1 = vcmask 7168   ;;  %s1418_s0 = inlined_call_operand.vmem [shape: f32[8,8,128], index: 0, kind: input, shape index: {}]   ;;  %s1419_s2 = inlined_call_operand.vmem [shape: f32[32,128], index: 2, kind: input, shape index: {}]   ;;  %s1420_s1 = inlined_call_operand.vmem [shape: f32[32,256], index: 1, kind: input, shape index: {}]   ;;  %s1421_s3 = inlined_call_operand.vmem [shape: f32[1,128], index: 3, kind: input, shape index: {}]   ;;  %s1422_s4 = inlined_call_operand.vmem [shape: f32[32,1], index: 4, kind: input, shape index: {}]   ;;  %s1423_s5 = inlined_call_operand.<no memory space> [shape: f32[1,1], index: 5, kind: input, shape index: {}]   ;;  %s1424_s6 = inlined_call_operand.vmem [shape: f32[8,1], index: 6, kind: output, shape index: {}]  }
   0x1   :  { %v41_v0 = vld [vmem:[%s1418_s0] sm:$0xff]  ;;  %v1131_v10 = vld [vmem:[%s1419_s2 + $0x18] sm:$0xff]  ;;  %v1136_v11 = vld [vmem:[%s1419_s2 + $0x10] sm:$0xff] }
   0x2   :  { %1013 = vtanh.f32 %v41_v0  ;;  %124 = vmatpush.msra.mxu2 %v1131_v10  ;;  %v1142_v12 = vld [vmem:[%s1420_s1 + $0x30] sm:$0xff]  ;;  %v1147_v13 = vld [vmem:[%s1420_s1 + $0x38] sm:$0xff]  ;;  %v1152_v14 = vld [vmem:[%s1419_s2 + $0x8] sm:$0xff] }
   0x3   :  { %81 = vmatpush.msra.mxu0 %v1142_v12  ;;  %101 = vmatpush.msra.mxu1 %v1147_v13  ;;  %v1159_v15 = vld [vmem:[%s1420_s1 + $0x20] sm:$0xff]  ;;  %v1164_v16 = vld [vmem:[%s1420_s1 + $0x28] sm:$0xff]  ;;  %v1170_v17 = vld [vmem:[%s1420_s1 + $0x10] sm:$0xff] }
   0x4   :  { %125 = vmatpush.msra.mxu2 %v1136_v11  ;;  %v1175_v18 = vld [vmem:[%s1420_s1 + $0x18] sm:$0xff]  ;;  %194 = vmatpush.msra.mxu3 %v1142_v12  ;;  %v1181_v19 = vld [vmem:[%s1419_s2] sm:$0xff]  ;;  %v1197_v21 = vld [vmem:[%s1420_s1 + $0x8] sm:$0xff] }
   0x5   :  { %82 = vmatpush.msra.mxu0 %v1159_v15  ;;  %102 = vmatpush.msra.mxu1 %v1164_v16  ;;  %v1189_v20 = vld [vmem:[%s1420_s1] sm:$0xff]  ;;  %v980_v26 = vld [vmem:[%s1418_s0 + $0x8] sm:$0xff]  ;;  %v984_v58 = vld [vmem:[%s1418_s0 + $0x10] sm:$0xff] }
   0x6   :  { %126 = vmatpush.msra.mxu2 %v1152_v14  ;;  %195 = vmatpush.msra.mxu3 %v1159_v15  ;;  %v1242_v31 = vld [vmem:[%s1421_s3] ss:$0 sm:$0xff] }
   0x7   :  { %83 = vmatpush.msra.mxu0 %v1170_v17  ;;  %103 = vmatpush.msra.mxu1 %v1175_v18 }
   0x8   :  { %v1014_v1 = vpop.eup %1013  ;;  %127 = vmatpush.msra.mxu2 %v1181_v19  ;;  %196 = vmatpush.msra.mxu3 %v1170_v17 }
   0x9   :  { %48 = vrot.lane.b32.xlu0 %v1014_v1, %s1077_s23  ;;  %v44_v2 = vmul.f32 0.5, %v1014_v1  ;;  %128 = vmatmul.f32.vlgmr.msra.gmra.mxu2 %v1079_v22 }
   0xa   :  { %84 = vmatpush.msra.mxu0 %v1189_v20  ;;  %104 = vmatpush.msra.mxu1 %v1197_v21 }
   0xb   :  { %v1119_v3 = vadd.f32 0.5, %v44_v2  ;;  %197 = vmatpush.msra.mxu3 %v1189_v20  ;;  %309 = vmatpush.msrb.mxu2 %v1142_v12 }
   0xc   :  { %214 = vmatpush.msrb.mxu0 %v1147_v13  ;;  %239 = vmatpush.msrb.mxu1 %v1131_v10 }
   0xd   :  { %v46_v6 = vmul.f32 0.0, %v1119_v3  ;;  %329 = vmatpush.msrb.mxu3 %v1147_v13  ;;  %310 = vmatpush.msrb.mxu2 %v1159_v15 }
   0xe   :  { %215 = vmatpush.msrb.mxu0 %v1164_v16  ;;  %240 = vmatpush.msrb.mxu1 %v1136_v11 }
   0xf   :  { %330 = vmatpush.msrb.mxu3 %v1164_v16  ;;  %311 = vmatpush.msrb.mxu2 %v1170_v17 }
  0x10   :  { %216 = vmatpush.msrb.mxu0 %v1175_v18  ;;  %241 = vmatpush.msrb.mxu1 %v1152_v14 }
  0x11   :  { %331 = vmatpush.msrb.mxu3 %v1175_v18  ;;  %312 = vmatpush.msrb.mxu2 %v1189_v20 }
  0x12   :  { %217 = vmatpush.msrb.mxu0 %v1197_v21  ;;  %242 = vmatpush.msrb.mxu1 %v1181_v19 }
  0x13   :  { %332 = vmatpush.msrb.mxu3 %v1197_v21  ;;  %444 = vmatpush.msra.mxu2 %v1147_v13 }
  0x15   :  { %445 = vmatpush.msra.mxu2 %v1164_v16 }
  0x17   :  { %446 = vmatpush.msra.mxu2 %v1175_v18 }
  0x19   :  { %447 = vmatpush.msra.mxu2 %v1197_v21 }
  0x7b   :  { %v49_v4 = vpop.permute.xlu0 %48 }
  0x7c   :  { %v51_v5 = vmul.f32 %v49_v4, %v1119_v3 }
  0x7e   :  { %53 = vrot.lane.b32.xlu0 %v51_v5, %s1078_s24 }
  0x8c   :  { %v129_v27 = vpop.f32.mrf.mxu2 }
  0xf0   :  { %v54_v7 = vpop.permute.xlu0 %53 }
  0xf1   :  { %v1124_v8 = vadd.f32 %v54_v7, %v46_v6 }
  0xf3   :  { %1015 = vtanh.f32 %v1124_v8 }
  0xf9   :  { %v1016_v9 = vpop.eup %1015 }
  0xfa   :  { %59 = vrot.lane.b32.xlu1 %v1016_v9, %s1077_s23 }
 0x16c   :  { %v60_v23 = vpop.permute.xlu1 %59 }
 0x16d   :  { %v62_v24 = vmul.f32 %v60_v23, %v1119_v3 }
 0x16f   :  { %64 = vrot.lane.b32.xlu1 %v62_v24, %s1078_s24 }
 0x1e1   :  { %v65_v25 = vpop.permute.xlu1 %64 }
 0x1e2   :  { %978 = vmatmul.msk.f32.vlgmr.msra.gmra.mxu0 %vm66_vm0, %v65_v25  ;;  %979 = vmatmul.msk.f32.vlgmr.msra.gmra.mxu1 %vm66_vm0, %v65_v25 }
 0x1e3   :  { %354 = vmatpush.msra.mxu0 %v1131_v10  ;;  %424 = vmatpush.msra.mxu1 %v1142_v12 }
 0x1e5   :  { %355 = vmatpush.msra.mxu0 %v1136_v11  ;;  %425 = vmatpush.msra.mxu1 %v1159_v15 }
 0x1e7   :  { %356 = vmatpush.msra.mxu0 %v1152_v14  ;;  %426 = vmatpush.msra.mxu1 %v1170_v17 }
 0x1e9   :  { %357 = vmatpush.msra.mxu0 %v1181_v19  ;;  %427 = vmatpush.msra.mxu1 %v1189_v20 }
 0x25f   :  { %v86_v28 = vpop.f32.mrf.mxu0  ;;  %v106_v29 = vpop.f32.mrf.mxu1 }
 0x260   :  { %v156_v30 = vadd.f32 %v980_v26, %v86_v28  ;;  %v132_v32 = vadd.f32 %v129_v27, %v106_v29 }
 0x262   :  { %1017 = vtanh.f32 %v156_v30  ;;  %v133_v33 = vadd.f32 %v1242_v31, %v132_v32 }
 0x264   :  { %1019 = vtanh.f32 %v133_v33 }
 0x268   :  { %v1018_v34 = vpop.eup %1017 }
 0x269   :  { %162 = vrot.lane.b32.xlu2 %v1018_v34, %s1077_s23  ;;  %v158_v36 = vmul.f32 0.5, %v1018_v34 }
 0x26a   :  { %v1020_v35 = vpop.eup %1019 }
 0x26b   :  { %v159_v37 = vadd.f32 0.5, %v158_v36  ;;  %v135_v40 = vmul.f32 0.5, %v1020_v35 }
 0x26d   :  { %v136_v41 = vadd.f32 0.5, %v135_v40  ;;  %v160_v44 = vmul.f32 %v159_v37, %v1124_v8 }
 0x26f   :  { %v137_v47 = vmul.f32 0.0, %v136_v41 }
 0x271   :  { %139 = vrot.lane.b32.xlu2 %v1020_v35, %s1077_s23 }
 0x2c3   :  { %v163_v38 = vpop.permute.xlu2 %162 }
 0x2c4   :  { %v165_v39 = vmul.f32 %v163_v38, %v159_v37  ;;  %v988_v38 = vld [vmem:[%s1418_s0 + $0x18] sm:$0xff] }
 0x2c6   :  { %167 = vrot.lane.b32.xlu0 %v165_v39, %s1078_s24 }
 0x2cb   :  { %v140_v42 = vpop.permute.xlu2 %139 }
 0x2cc   :  { %v142_v43 = vmul.f32 %v140_v42, %v136_v41 }
 0x2ce   :  { %144 = vrot.lane.b32.xlu1 %v142_v43, %s1078_s24 }
 0x338   :  { %v168_v45 = vpop.permute.xlu0 %167 }
 0x339   :  { %v170_v46 = vadd.f32 %v168_v45, %v160_v44 }
 0x33b   :  { %1021 = vtanh.f32 %v170_v46 }
 0x340   :  { %v145_v48 = vpop.permute.xlu1 %144 }
 0x341   :  { %v1022_v49 = vpop.eup %1021  ;;  %v147_v50 = vadd.f32 %v145_v48, %v137_v47 }
 0x342   :  { %173 = vrot.lane.b32.xlu2 %v1022_v49, %s1077_s23 }
 0x343   :  { %1023 = vtanh.f32 %v147_v50 }
 0x349   :  { %v1024_v51 = vpop.eup %1023 }
 0x34a   :  { %150 = vrot.lane.b32.xlu0 %v1024_v51, %s1077_s23 }
 0x39c   :  { %v174_v52 = vpop.permute.xlu2 %173 }
 0x39d   :  { %v176_v53 = vmul.f32 %v174_v52, %v159_v37 }
 0x39f   :  { %178 = vrot.lane.b32.xlu1 %v176_v53, %s1078_s24 }
 0x3bc   :  { %v151_v54 = vpop.permute.xlu0 %150 }
 0x3bd   :  { %v153_v55 = vmul.f32 %v151_v54, %v136_v41 }
 0x3bf   :  { %223 = vrot.lane.b32.xlu2 %v153_v55, %s1078_s24 }
 0x411   :  { %v179_v56 = vpop.permute.xlu1 %178 }
 0x412   :  { %981 = vmatmul.msk.f32.vlgmr.msra.gmra.mxu3 %vm66_vm0, %v179_v56  ;;  %982 = vmatmul.msk.f32.vlgmr.msrb.gmra.mxu0 %vm66_vm0, %v179_v56 }
 0x413   :  { %469 = vmatpush.msra.mxu3 %v1131_v10  ;;  %539 = vmatpush.msrb.mxu0 %v1142_v12 }
 0x415   :  { %470 = vmatpush.msra.mxu3 %v1136_v11  ;;  %540 = vmatpush.msrb.mxu0 %v1159_v15 }
 0x417   :  { %471 = vmatpush.msra.mxu3 %v1152_v14  ;;  %541 = vmatpush.msrb.mxu0 %v1170_v17 }
 0x419   :  { %v224_v57 = vpop.permute.xlu2 %223  ;;  %472 = vmatpush.msra.mxu3 %v1181_v19  ;;  %542 = vmatpush.msrb.mxu0 %v1189_v20 }
 0x41a   :  { %983 = vmatmul.msk.f32.vlgmr.msrb.gmra.mxu1 %vm66_vm0, %v224_v57 }
 0x41b   :  { %559 = vmatpush.msrb.mxu1 %v1147_v13 }
 0x41d   :  { %560 = vmatpush.msrb.mxu1 %v1164_v16 }
 0x41f   :  { %561 = vmatpush.msrb.mxu1 %v1175_v18 }
 0x421   :  { %562 = vmatpush.msrb.mxu1 %v1197_v21 }
 0x48f   :  { %v219_v61 = vpop.f32.mrf.mxu0 }
 0x495   :  { %v199_v59 = vpop.f32.mrf.mxu3 }
 0x496   :  { %v271_v60 = vadd.f32 %v984_v58, %v199_v59 }
 0x497   :  { %v244_v62 = vpop.f32.mrf.mxu1 }
 0x498   :  { %1025 = vtanh.f32 %v271_v60  ;;  %v247_v63 = vadd.f32 %v244_v62, %v219_v61 }
 0x49a   :  { %v248_v0 = vadd.f32 %v1242_v31, %v247_v63 }
 0x49c   :  { %1027 = vtanh.f32 %v248_v0 }
 0x49e   :  { %v1026_v1 = vpop.eup %1025 }
 0x49f   :  { %277 = vrot.lane.b32.xlu0 %v1026_v1, %s1077_s23  ;;  %v273_v3 = vmul.f32 0.5, %v1026_v1 }
 0x4a1   :  { %v274_v4 = vadd.f32 0.5, %v273_v3 }
 0x4a2   :  { %v1028_v2 = vpop.eup %1027 }
 0x4a3   :  { %254 = vrot.lane.b32.xlu1 %v1028_v2, %s1077_s23  ;;  %v250_v5 = vmul.f32 0.5, %v1028_v2  ;;  %v275_v23 = vmul.f32 %v274_v4, %v170_v46 }
 0x4a5   :  { %v251_v8 = vadd.f32 0.5, %v250_v5 }
 0x4a7   :  { %v252_v27 = vmul.f32 %v251_v8, %v147_v50 }
 0x511   :  { %v278_v6 = vpop.permute.xlu0 %277 }
 0x512   :  { %v280_v7 = vmul.f32 %v278_v6, %v274_v4 }
 0x514   :  { %282 = vrot.lane.b32.xlu2 %v280_v7, %s1078_s24 }
 0x515   :  { %v255_v9 = vpop.permute.xlu1 %254 }
 0x516   :  { %v257_v22 = vmul.f32 %v255_v9, %v251_v8 }
 0x518   :  { %259 = vrot.lane.b32.xlu0 %v257_v22, %s1078_s24 }
 0x56e   :  { %v283_v24 = vpop.permute.xlu2 %282 }
 0x56f   :  { %v285_v25 = vadd.f32 %v283_v24, %v275_v23 }
 0x571   :  { %1029 = vtanh.f32 %v285_v25 }
 0x577   :  { %v1030_v26 = vpop.eup %1029 }
 0x578   :  { %288 = vrot.lane.b32.xlu1 %v1030_v26, %s1077_s23 }
 0x58a   :  { %v260_v28 = vpop.permute.xlu0 %259 }
 0x58b   :  { %v262_v29 = vadd.f32 %v260_v28, %v252_v27 }
 0x58d   :  { %1031 = vtanh.f32 %v262_v29 }
 0x593   :  { %v1032_v30 = vpop.eup %1031 }
 0x594   :  { %265 = vrot.lane.b32.xlu2 %v1032_v30, %s1077_s23 }
 0x5ea   :  { %v289_v32 = vpop.permute.xlu1 %288 }
 0x5eb   :  { %v291_v33 = vmul.f32 %v289_v32, %v274_v4 }
 0x5ed   :  { %293 = vrot.lane.b32.xlu0 %v291_v33, %s1078_s24 }
 0x5ee   :  { %v266_v34 = vpop.permute.xlu2 %265 }
 0x5ef   :  { %v268_v35 = vmul.f32 %v266_v34, %v251_v8 }
 0x5f1   :  { %338 = vrot.lane.b32.xlu1 %v268_v35, %s1078_s24 }
 0x65f   :  { %v294_v36 = vpop.permute.xlu0 %293 }
 0x660   :  { %985 = vmatmul.msk.f32.vlgmr.msrb.gmra.mxu2 %vm66_vm0, %v294_v36  ;;  %986 = vmatmul.msk.f32.vlgmr.msrb.gmra.mxu3 %vm66_vm0, %v294_v36 }
 0x661   :  { %584 = vmatpush.msrb.mxu2 %v1131_v10  ;;  %654 = vmatpush.msrb.mxu3 %v1142_v12 }
 0x663   :  { %v339_v37 = vpop.permute.xlu1 %338  ;;  %585 = vmatpush.msrb.mxu2 %v1136_v11  ;;  %655 = vmatpush.msrb.mxu3 %v1159_v15 }
 0x664   :  { %987 = vmatmul.msk.f32.vlgmr.msra.gmra.mxu0 %vm66_vm0, %v339_v37 }
 0x665   :  { %586 = vmatpush.msrb.mxu2 %v1152_v14  ;;  %674 = vmatpush.msra.mxu0 %v1147_v13 }
 0x666   :  { %656 = vmatpush.msrb.mxu3 %v1170_v17 }
 0x667   :  { %587 = vmatpush.msrb.mxu2 %v1181_v19  ;;  %675 = vmatpush.msra.mxu0 %v1164_v16 }
 0x668   :  { %657 = vmatpush.msrb.mxu3 %v1189_v20 }
 0x669   :  { %676 = vmatpush.msra.mxu0 %v1175_v18 }
 0x66b   :  { %677 = vmatpush.msra.mxu0 %v1197_v21 }
 0x6e1   :  { %v359_v39 = vpop.f32.mrf.mxu0 }
 0x6e3   :  { %v314_v40 = vpop.f32.mrf.mxu2  ;;  %v334_v41 = vpop.f32.mrf.mxu3 }
 0x6e4   :  { %v386_v42 = vadd.f32 %v988_v38, %v314_v40  ;;  %v362_v43 = vadd.f32 %v359_v39, %v334_v41 }
 0x6e6   :  { %1033 = vtanh.f32 %v386_v42  ;;  %v363_v44 = vadd.f32 %v1242_v31, %v362_v43 }
 0x6e8   :  { %1035 = vtanh.f32 %v363_v44 }
 0x6ec   :  { %v1034_v45 = vpop.eup %1033 }
 0x6ed   :  { %392 = vrot.lane.b32.xlu0 %v1034_v45, %s1077_s23  ;;  %v388_v51 = vmul.f32 0.5, %v1034_v45 }
 0x6ee   :  { %v1036_v46 = vpop.eup %1035 }
 0x6ef   :  { %369 = vrot.lane.b32.xlu2 %v1036_v46, %s1077_s23  ;;  %v365_v47 = vmul.f32 0.5, %v1036_v46  ;;  %v389_v52 = vadd.f32 0.5, %v388_v51 }
 0x6f1   :  { %v366_v48 = vadd.f32 0.5, %v365_v47  ;;  %v390_v55 = vmul.f32 %v389_v52, %v285_v25 }
 0x6f3   :  { %v367_v58 = vmul.f32 %v366_v48, %v262_v29 }
 0x749   :  { %v370_v49 = vpop.permute.xlu2 %369 }
 0x74a   :  { %v372_v50 = vmul.f32 %v370_v49, %v366_v48 }
 0x74c   :  { %374 = vrot.lane.b32.xlu1 %v372_v50, %s1078_s24 }
 0x75f   :  { %v393_v53 = vpop.permute.xlu0 %392 }
 0x760   :  { %v395_v54 = vmul.f32 %v393_v53, %v389_v52 }
 0x762   :  { %397 = vrot.lane.b32.xlu2 %v395_v54, %s1078_s24 }
 0x7bc   :  { %v398_v56 = vpop.permute.xlu2 %397 }
 0x7bd   :  { %v400_v57 = vadd.f32 %v398_v56, %v390_v55 }
 0x7be   :  { %v375_v59 = vpop.permute.xlu1 %374 }
 0x7bf   :  { %1037 = vtanh.f32 %v400_v57  ;;  %v377_v60 = vadd.f32 %v375_v59, %v367_v58 }
 0x7c1   :  { %1039 = vtanh.f32 %v377_v60 }
 0x7c5   :  { %v1038_v61 = vpop.eup %1037 }
 0x7c6   :  { %403 = vrot.lane.b32.xlu1 %v1038_v61, %s1077_s23 }
 0x7c7   :  { %v1040_v62 = vpop.eup %1039 }
 0x7c8   :  { %380 = vrot.lane.b32.xlu0 %v1040_v62, %s1077_s23 }
 0x838   :  { %v404_v63 = vpop.permute.xlu1 %403 }
 0x839   :  { %v406_v0 = vmul.f32 %v404_v63, %v389_v52 }
 0x83a   :  { %v381_v1 = vpop.permute.xlu0 %380 }
 0x83b   :  { %v383_v2 = vmul.f32 %v381_v1, %v366_v48  ;;  %408 = vrot.lane.b32.xlu2 %v406_v0, %s1078_s24 }
 0x83d   :  { %453 = vrot.lane.b32.xlu0 %v383_v2, %s1078_s24 }
 0x895   :  { %v409_v3 = vpop.permute.xlu2 %408 }
 0x896   :  { %989 = vmatmul.msk.f32.vlgmr.msra.gmra.mxu1 %vm66_vm0, %v409_v3  ;;  %990 = vmatmul.msk.f32.vlgmr.msra.gmra.mxu2 %vm66_vm0, %v409_v3 }
 0x897   :  { %699 = vmatpush.msra.mxu1 %v1131_v10  ;;  %769 = vmatpush.msra.mxu2 %v1142_v12  ;;  %v992_v12 = vld [vmem:[%s1418_s0 + $0x20] sm:$0xff] }
 0x899   :  { %700 = vmatpush.msra.mxu1 %v1136_v11  ;;  %770 = vmatpush.msra.mxu2 %v1159_v15 }
 0x89b   :  { %701 = vmatpush.msra.mxu1 %v1152_v14  ;;  %771 = vmatpush.msra.mxu2 %v1170_v17 }
 0x89d   :  { %702 = vmatpush.msra.mxu1 %v1181_v19  ;;  %772 = vmatpush.msra.mxu2 %v1189_v20 }
 0x8af   :  { %v454_v4 = vpop.permute.xlu0 %453 }
 0x8b0   :  { %991 = vmatmul.msk.f32.vlgmr.msra.gmra.mxu3 %vm66_vm0, %v454_v4  ;;  %v1000_v4 = vld [vmem:[%s1418_s0 + $0x30] sm:$0xff] }
 0x8b1   :  { %789 = vmatpush.msra.mxu3 %v1147_v13 }
 0x8b3   :  { %790 = vmatpush.msra.mxu3 %v1164_v16 }
 0x8b5   :  { %791 = vmatpush.msra.mxu3 %v1175_v18 }
 0x8b7   :  { %792 = vmatpush.msra.mxu3 %v1197_v21 }
 0x913   :  { %v429_v15 = vpop.f32.mrf.mxu1 }
 0x914   :  { %v501_v17 = vadd.f32 %v992_v12, %v429_v15 }
 0x916   :  { %1041 = vtanh.f32 %v501_v17 }
 0x919   :  { %v449_v20 = vpop.f32.mrf.mxu2 }
 0x91c   :  { %v1042_v5 = vpop.eup %1041 }
 0x91d   :  { %507 = vrot.lane.b32.xlu1 %v1042_v5, %s1077_s23  ;;  %v503_v22 = vmul.f32 0.5, %v1042_v5 }
 0x91f   :  { %v504_v23 = vadd.f32 0.5, %v503_v22 }
 0x921   :  { %v505_v30 = vmul.f32 %v504_v23, %v400_v57 }
 0x933   :  { %v474_v6 = vpop.f32.mrf.mxu3 }
 0x934   :  { %v477_v7 = vadd.f32 %v474_v6, %v449_v20 }
 0x936   :  { %v478_v8 = vadd.f32 %v1242_v31, %v477_v7 }
 0x938   :  { %1043 = vtanh.f32 %v478_v8 }
 0x93e   :  { %v1044_v9 = vpop.eup %1043 }
 0x93f   :  { %484 = vrot.lane.b32.xlu2 %v1044_v9, %s1077_s23  ;;  %v480_v26 = vmul.f32 0.5, %v1044_v9 }
 0x941   :  { %v481_v27 = vadd.f32 0.5, %v480_v26 }
 0x943   :  { %v482_v35 = vmul.f32 %v481_v27, %v377_v60 }
 0x98f   :  { %v508_v24 = vpop.permute.xlu1 %507 }
 0x990   :  { %v510_v25 = vmul.f32 %v508_v24, %v504_v23 }
 0x992   :  { %512 = vrot.lane.b32.xlu0 %v510_v25, %s1078_s24 }
 0x999   :  { %v485_v28 = vpop.permute.xlu2 %484 }
 0x99a   :  { %v487_v29 = vmul.f32 %v485_v28, %v481_v27 }
 0x99c   :  { %489 = vrot.lane.b32.xlu1 %v487_v29, %s1078_s24 }
 0xa04   :  { %v513_v32 = vpop.permute.xlu0 %512 }
 0xa05   :  { %v515_v33 = vadd.f32 %v513_v32, %v505_v30 }
 0xa07   :  { %1045 = vtanh.f32 %v515_v33 }
 0xa0d   :  { %v1046_v34 = vpop.eup %1045 }
 0xa0e   :  { %v490_v36 = vpop.permute.xlu1 %489  ;;  %518 = vrot.lane.b32.xlu2 %v1046_v34, %s1077_s23 }
 0xa0f   :  { %v492_v37 = vadd.f32 %v490_v36, %v482_v35 }
 0xa11   :  { %1047 = vtanh.f32 %v492_v37 }
 0xa17   :  { %v1048_v38 = vpop.eup %1047 }
 0xa18   :  { %495 = vrot.lane.b32.xlu0 %v1048_v38, %s1077_s23 }
 0xa68   :  { %v519_v39 = vpop.permute.xlu2 %518 }
 0xa69   :  { %v521_v40 = vmul.f32 %v519_v39, %v504_v23 }
 0xa6b   :  { %523 = vrot.lane.b32.xlu1 %v521_v40, %s1078_s24 }
 0xa8a   :  { %v496_v41 = vpop.permute.xlu0 %495 }
 0xa8b   :  { %v498_v42 = vmul.f32 %v496_v41, %v481_v27 }
 0xa8d   :  { %568 = vrot.lane.b32.xlu2 %v498_v42, %s1078_s24 }
 0xadd   :  { %v524_v43 = vpop.permute.xlu1 %523 }
 0xade   :  { %993 = vmatmul.msk.f32.vlgmr.msrb.gmra.mxu0 %vm66_vm0, %v524_v43  ;;  %994 = vmatmul.msk.f32.vlgmr.msrb.gmra.mxu1 %vm66_vm0, %v524_v43 }
 0xadf   :  { %814 = vmatpush.msrb.mxu0 %v1131_v10  ;;  %884 = vmatpush.msrb.mxu1 %v1147_v13  ;;  %v996_v13 = vld [vmem:[%s1418_s0 + $0x28] sm:$0xff] }
 0xae1   :  { %815 = vmatpush.msrb.mxu0 %v1136_v11  ;;  %885 = vmatpush.msrb.mxu1 %v1164_v16 }
 0xae3   :  { %816 = vmatpush.msrb.mxu0 %v1152_v14  ;;  %886 = vmatpush.msrb.mxu1 %v1175_v18 }
 0xae5   :  { %817 = vmatpush.msrb.mxu0 %v1181_v19  ;;  %887 = vmatpush.msrb.mxu1 %v1197_v21 }
 0xae7   :  { %v569_v44 = vpop.permute.xlu2 %568 }
 0xae8   :  { %995 = vmatmul.msk.f32.vlgmr.msrb.gmra.mxu2 %vm66_vm0, %v569_v44  ;;  %v1004_v44 = vld [vmem:[%s1418_s0 + $0x38] sm:$0xff] }
 0xae9   :  { %909 = vmatpush.msrb.mxu2 %v1131_v10 }
 0xaeb   :  { %910 = vmatpush.msrb.mxu2 %v1136_v11 }
 0xaed   :  { %911 = vmatpush.msrb.mxu2 %v1152_v14 }
 0xaef   :  { %912 = vmatpush.msrb.mxu2 %v1181_v19 }
 0xb5b   :  { %v544_v16 = vpop.f32.mrf.mxu0  ;;  %v564_v21 = vpop.f32.mrf.mxu1 }
 0xb5c   :  { %v616_v18 = vadd.f32 %v996_v13, %v544_v16 }
 0xb5e   :  { %1049 = vtanh.f32 %v616_v18 }
 0xb64   :  { %v1050_v45 = vpop.eup %1049 }
 0xb65   :  { %622 = vrot.lane.b32.xlu0 %v1050_v45, %s1077_s23  ;;  %v618_v14 = vmul.f32 0.5, %v1050_v45 }
 0xb67   :  { %v619_v19 = vadd.f32 0.5, %v618_v14 }
 0xb69   :  { %v620_v54 = vmul.f32 %v619_v19, %v515_v33 }
 0xb6b   :  { %v589_v46 = vpop.f32.mrf.mxu2 }
 0xb6c   :  { %v592_v47 = vadd.f32 %v589_v46, %v564_v21 }
 0xb6e   :  { %v593_v10 = vadd.f32 %v1242_v31, %v592_v47 }
 0xb70   :  { %1051 = vtanh.f32 %v593_v10 }
 0xb76   :  { %v1052_v11 = vpop.eup %1051 }
 0xb77   :  { %599 = vrot.lane.b32.xlu1 %v1052_v11, %s1077_s23  ;;  %v595_v50 = vmul.f32 0.5, %v1052_v11 }
 0xb79   :  { %v596_v51 = vadd.f32 0.5, %v595_v50 }
 0xb7b   :  { %v597_v58 = vmul.f32 %v596_v51, %v492_v37 }
 0xbd7   :  { %v623_v48 = vpop.permute.xlu0 %622 }
 0xbd8   :  { %v625_v49 = vmul.f32 %v623_v48, %v619_v19 }
 0xbda   :  { %627 = vrot.lane.b32.xlu2 %v625_v49, %s1078_s24 }
 0xbe9   :  { %v600_v52 = vpop.permute.xlu1 %599 }
 0xbea   :  { %v602_v53 = vmul.f32 %v600_v52, %v596_v51 }
 0xbec   :  { %604 = vrot.lane.b32.xlu0 %v602_v53, %s1078_s24 }
 0xc34   :  { %v628_v55 = vpop.permute.xlu2 %627 }
 0xc35   :  { %v630_v56 = vadd.f32 %v628_v55, %v620_v54 }
 0xc37   :  { %1053 = vtanh.f32 %v630_v56 }
 0xc3d   :  { %v1054_v57 = vpop.eup %1053 }
 0xc3e   :  { %633 = vrot.lane.b32.xlu1 %v1054_v57, %s1077_s23 }
 0xc5e   :  { %v605_v59 = vpop.permute.xlu0 %604 }
 0xc5f   :  { %v607_v60 = vadd.f32 %v605_v59, %v597_v58 }
 0xc61   :  { %1055 = vtanh.f32 %v607_v60 }
 0xc67   :  { %v1056_v61 = vpop.eup %1055 }
 0xc68   :  { %610 = vrot.lane.b32.xlu2 %v1056_v61, %s1077_s23 }
 0xcb0   :  { %v634_v62 = vpop.permute.xlu1 %633 }
 0xcb1   :  { %v636_v63 = vmul.f32 %v634_v62, %v619_v19 }
 0xcb3   :  { %638 = vrot.lane.b32.xlu0 %v636_v63, %s1078_s24 }
 0xcc2   :  { %v611_v0 = vpop.permute.xlu2 %610 }
 0xcc3   :  { %v613_v1 = vmul.f32 %v611_v0, %v596_v51 }
 0xcc5   :  { %683 = vrot.lane.b32.xlu1 %v613_v1, %s1078_s24 }
 0xd25   :  { %v639_v2 = vpop.permute.xlu0 %638 }
 0xd26   :  { %997 = vmatmul.msk.f32.vlgmr.msrb.gmra.mxu3 %vm66_vm0, %v639_v2  ;;  %998 = vmatmul.msk.f32.vlgmr.msra.gmra.mxu0 %vm66_vm0, %v639_v2 }
 0xd37   :  { %v684_v3 = vpop.permute.xlu1 %683 }
 0xd38   :  { %999 = vmatmul.msk.f32.vlgmr.msra.gmra.mxu1 %vm66_vm0, %v684_v3 }
 0xda3   :  { %v679_v5 = vpop.f32.mrf.mxu0 }
 0xda9   :  { %v659_v12 = vpop.f32.mrf.mxu3 }
 0xdaa   :  { %v731_v15 = vadd.f32 %v1000_v4, %v659_v12 }
 0xdac   :  { %1057 = vtanh.f32 %v731_v15 }
 0xdb2   :  { %v1058_v17 = vpop.eup %1057 }
 0xdb3   :  { %737 = vrot.lane.b32.xlu2 %v1058_v17, %s1077_s23  ;;  %v733_v9 = vmul.f32 0.5, %v1058_v17 }
 0xdb5   :  { %v704_v20 = vpop.f32.mrf.mxu1  ;;  %v734_v22 = vadd.f32 0.5, %v733_v9 }
 0xdb6   :  { %v707_v6 = vadd.f32 %v704_v20, %v679_v5 }
 0xdb7   :  { %v735_v29 = vmul.f32 %v734_v22, %v630_v56 }
 0xdb8   :  { %v708_v7 = vadd.f32 %v1242_v31, %v707_v6 }
 0xdba   :  { %1059 = vtanh.f32 %v708_v7 }
 0xdc0   :  { %v1060_v8 = vpop.eup %1059 }
 0xdc1   :  { %714 = vrot.lane.b32.xlu0 %v1060_v8, %s1077_s23  ;;  %v710_v25 = vmul.f32 0.5, %v1060_v8 }
 0xdc3   :  { %v711_v26 = vadd.f32 0.5, %v710_v25  ;;  %v940_v25 = vld [vmem:[%s1422_s4 + $0x8] sm:$0xff] }
 0xdc5   :  { %v712_v34 = vmul.f32 %v711_v26, %v607_v60 }
 0xe0d   :  { %v738_v23 = vpop.permute.xlu2 %737 }
 0xe0e   :  { %v740_v24 = vmul.f32 %v738_v23, %v734_v22 }
 0xe10   :  { %742 = vrot.lane.b32.xlu1 %v740_v24, %s1078_s24  ;;  %v941_v24 = vld [vmem:[%s1422_s4 + $0x10] sm:$0xff] }
 0xe33   :  { %v715_v27 = vpop.permute.xlu0 %714 }
 0xe34   :  { %v717_v28 = vmul.f32 %v715_v27, %v711_v26 }
 0xe36   :  { %719 = vrot.lane.b32.xlu2 %v717_v28, %s1078_s24 }
 0xe82   :  { %v743_v30 = vpop.permute.xlu1 %742 }
 0xe83   :  { %v745_v32 = vadd.f32 %v743_v30, %v735_v29  ;;  %v11_v29 = vstv %s1423_s5 }
 0xe84   :  { %12 = vst [vmem:[#allocation2] sm:$0x1] %v11_v29 }
 0xe85   :  { %1061 = vtanh.f32 %v745_v32 }
 0xe8b   :  { %v1062_v33 = vpop.eup %1061 }
 0xe8c   :  { %748 = vrot.lane.b32.xlu0 %v1062_v33, %s1077_s23 }
 0xe90   :  { %v720_v35 = vpop.permute.xlu2 %719 }
 0xe91   :  { %v722_v36 = vadd.f32 %v720_v35, %v712_v34 }
 0xe93   :  { %1063 = vtanh.f32 %v722_v36 }
 0xe99   :  { %v1064_v37 = vpop.eup %1063 }
 0xe9a   :  { %725 = vrot.lane.b32.xlu1 %v1064_v37, %s1077_s23 }
 0xefe   :  { %v749_v38 = vpop.permute.xlu0 %748 }
 0xeff   :  { %v751_v39 = vmul.f32 %v749_v38, %v734_v22 }
 0xf01   :  { %753 = vrot.lane.b32.xlu2 %v751_v39, %s1078_s24 }
 0xf0c   :  { %v726_v40 = vpop.permute.xlu1 %725 }
 0xf0d   :  { %v728_v41 = vmul.f32 %v726_v40, %v711_v26  ;;  %v939_v26 = vld [vmem:[%s1422_s4] sm:$0xff] }
 0xf0f   :  { %798 = vrot.lane.b32.xlu0 %v728_v41, %s1078_s24 }
 0xf5b   :  { %v754_v42 = vpop.permute.xlu2 %753 }
 0xf5c   :  { %1001 = vmatmul.msk.f32.vlgmr.msra.gmra.mxu2 %vm66_vm0, %v754_v42  ;;  %1002 = vmatmul.msk.f32.vlgmr.msra.gmra.mxu3 %vm66_vm0, %v754_v42 }
 0xf81   :  { %v799_v43 = vpop.permute.xlu0 %798 }
 0xf82   :  { %1003 = vmatmul.msk.f32.vlgmr.msrb.gmra.mxu0 %vm66_vm0, %v799_v43 }
 0xfdf   :  { %v774_v13 = vpop.f32.mrf.mxu2  ;;  %v794_v45 = vpop.f32.mrf.mxu3 }
 0xfe0   :  { %v846_v16 = vadd.f32 %v1004_v44, %v774_v13 }
 0xfe2   :  { %1065 = vtanh.f32 %v846_v16 }
 0xfe8   :  { %v1066_v18 = vpop.eup %1065 }
 0xfe9   :  { %852 = vrot.lane.b32.xlu2 %v1066_v18, %s1077_s23  ;;  %v848_v11 = vmul.f32 0.5, %v1066_v18 }
 0xfeb   :  { %v849_v14 = vadd.f32 0.5, %v848_v11 }
 0xfed   :  { %v850_v53 = vmul.f32 %v849_v14, %v745_v32  ;;  %v1012_v32 = vld [vmem:[#allocation2] ss:$0 sm:$0xff] }
 0xfff   :  { %v819_v21 = vpop.f32.mrf.mxu0 }
0x1000   :  { %v822_v46 = vadd.f32 %v819_v21, %v794_v45 }
0x1002   :  { %v823_v47 = vadd.f32 %v1242_v31, %v822_v46 }
0x1004   :  { %1067 = vtanh.f32 %v823_v47 }
0x100a   :  { %v1068_v10 = vpop.eup %1067 }
0x100b   :  { %829 = vrot.lane.b32.xlu1 %v1068_v10, %s1077_s23  ;;  %v825_v49 = vmul.f32 0.5, %v1068_v10 }
0x100d   :  { %v826_v50 = vadd.f32 0.5, %v825_v49 }
0x100f   :  { %v827_v57 = vmul.f32 %v826_v50, %v722_v36 }
0x1043   :  { %v853_v19 = vpop.permute.xlu2 %852 }
0x1044   :  { %v855_v48 = vmul.f32 %v853_v19, %v849_v14 }
0x1046   :  { %857 = vrot.lane.b32.xlu1 %v855_v48, %s1078_s24 }
0x107d   :  { %v830_v51 = vpop.permute.xlu1 %829 }
0x107e   :  { %v832_v52 = vmul.f32 %v830_v51, %v826_v50 }
0x1080   :  { %834 = vrot.lane.b32.xlu0 %v832_v52, %s1078_s24 }
0x10b8   :  { %v858_v54 = vpop.permute.xlu1 %857 }
0x10b9   :  { %v860_v55 = vadd.f32 %v858_v54, %v850_v53 }
0x10bb   :  { %1069 = vtanh.f32 %v860_v55 }
0x10c1   :  { %v1070_v56 = vpop.eup %1069 }
0x10c2   :  { %863 = vrot.lane.b32.xlu0 %v1070_v56, %s1077_s23 }
0x10f2   :  { %v835_v58 = vpop.permute.xlu0 %834 }
0x10f3   :  { %v837_v59 = vadd.f32 %v835_v58, %v827_v57 }
0x10f5   :  { %1071 = vtanh.f32 %v837_v59 }
0x10fb   :  { %v1072_v60 = vpop.eup %1071 }
0x10fc   :  { %840 = vrot.lane.b32.xlu2 %v1072_v60, %s1077_s23 }
0x1134   :  { %v864_v61 = vpop.permute.xlu0 %863 }
0x1135   :  { %v866_v62 = vmul.f32 %v864_v61, %v849_v14 }
0x1137   :  { %868 = vrot.lane.b32.xlu2 %v866_v62, %s1078_s24 }
0x1156   :  { %v841_v63 = vpop.permute.xlu2 %840 }
0x1157   :  { %v843_v0 = vmul.f32 %v841_v63, %v826_v50 }
0x1159   :  { %893 = vrot.lane.b32.xlu1 %v843_v0, %s1078_s24 }
0x1191   :  { %v869_v1 = vpop.permute.xlu2 %868 }
0x1192   :  { %1005 = vmatmul.msk.f32.vlgmr.msrb.gmra.mxu1 %vm66_vm0, %v869_v1 }
0x11cb   :  { %v894_v2 = vpop.permute.xlu1 %893 }
0x11cc   :  { %1006 = vmatmul.msk.f32.vlgmr.msrb.gmra.mxu2 %vm66_vm0, %v894_v2 }
0x120f   :  { %v889_v3 = vpop.f32.mrf.mxu1 }
0x124f   :  { %v914_v4 = vpop.f32.mrf.mxu2 }
0x1250   :  { %v917_v12 = vadd.f32 %v914_v4, %v889_v3 }
0x1252   :  { %v918_v15 = vadd.f32 %v1242_v31, %v917_v12  ;;  %v942_v31 = vld [vmem:[%s1422_s4 + $0x18] sm:$0xff] }
0x1253   :  { %964 = vmatpush.msrb.mxu3 %v942_v31 }
0x1254   :  { %1073 = vtanh.f32 %v918_v15 }
0x1255   :  { %965 = vmatpush.msrb.mxu3 %v941_v24 }
0x1257   :  { %966 = vmatpush.msrb.mxu3 %v940_v25 }
0x1259   :  { %967 = vmatpush.msrb.mxu3 %v939_v26 }
0x125a   :  { %v1074_v17 = vpop.eup %1073 }
0x125b   :  { %924 = vrot.lane.b32.xlu0 %v1074_v17, %s1077_s23  ;;  %v920_v5 = vmul.f32 0.5, %v1074_v17 }
0x125d   :  { %v921_v20 = vadd.f32 0.5, %v920_v5 }
0x125f   :  { %v922_v8 = vmul.f32 %v921_v20, %v837_v59 }
0x12cd   :  { %v925_v6 = vpop.permute.xlu0 %924 }
0x12ce   :  { %v927_v7 = vmul.f32 %v925_v6, %v921_v20 }
0x12d0   :  { %929 = vrot.lane.b32.xlu1 %v927_v7, %s1078_s24 }
0x1342   :  { %v930_v9 = vpop.permute.xlu1 %929 }
0x1343   :  { %v932_v22 = vadd.f32 %v930_v9, %v922_v8 }
0x1345   :  { %1075 = vtanh.f32 %v932_v22 }
0x134b   :  { %v1076_v23 = vpop.eup %1075 }
0x134c   :  { %935 = vrot.lane.b32.xlu2 %v1076_v23, %s1077_s23 }
0x13a6   :  { %v936_v27 = vpop.permute.xlu2 %935 }
0x13a7   :  { %v938_v28 = vmul.f32 %v936_v27, %v921_v20 }
0x13a9   :  { %948 = vrot.lane.b32.xlu0 %v938_v28, %s1078_s24 }
0x141b   :  { %v949_v30 = vpop.permute.xlu0 %948 }
0x141c   :  { %1007 = vmatmul.msk.f32.vlgmr.msrb.gmra.mxu3 %vm66_vm0, %v949_v30 }
0x149f   :  { %v969_v33 = vpop.f32.mrf.mxu3 }
0x14a0   :  { %v970_v34 = vadd.f32 %v1012_v32, %v969_v33 }
0x14a2   :  { %973 = vst.msk [vmem:[%s1424_s6] sm:$0xff] %vm972_vm1, %v970_v34 }

</bundles_post_ra>
